<compile_context>
chip_gen: v7x
topology: tpu7x:2x2x1
jax: 0.10.0
libtpu: 0.0.40
codegen_flags: <defaults>
</compile_context>

<pallas_src>
import functools

import numpy as np
import jax
import jax.numpy as jnp
from jax import lax
from jax.experimental import pallas as pl
from jax.experimental.pallas import tpu as pltpu


SIGMA = 25.0


def marginal_prob_std(t):
    return jnp.sqrt((SIGMA ** (2.0 * t) - 1.0) / (2.0 * np.log(SIGMA)))


def _round_up(a, m):
    return -(-a // m) * m


# ----------------------------------------------------------------------------
# Single fused Pallas kernel: embedding MLP + all hidden layers + output layer
# (executed once per batch tile of the grid).
# ----------------------------------------------------------------------------
def _mlp_scorenet_kernel(
        x_ref, fourier_ref, inv_std_ref,
        embed_wT_ref, embed_b_ref,
        lin0_wT_ref, lin0_b_ref,
        linmid_wT_ref, linmid_b_ref,
        linlast_wT_ref, linlast_b_ref,
        embcat_wT_ref, embcat_b_ref,
        gamma_ref, beta_ref,
        gmat_div_ref, gmatT_ref,
        out_ref,
        *, num_hidden, hidden_dim, out_dim, seg_stride, batch_tile,
        eps, normalize):
    f32 = jnp.float32
    bf16 = jnp.bfloat16
    H = hidden_dim
    D = out_dim
    Hs = seg_stride        # 128-aligned stride of each embcat segment
    TM = batch_tile

    def swish(v):
        return v * jax.nn.sigmoid(v)

    def mm(a, w_bf16):
        # bf16 operands on the MXU, f32 accumulation (no-op cast if already bf16).
        return jnp.dot(a.astype(bf16), w_bf16, preferred_element_type=f32)

    # --- time embedding: swish(Linear(GaussianFourier(t))) ------------------
    embed = swish(mm(fourier_ref[...], embed_wT_ref[...]) + embed_b_ref[...])

    # --- ALL time-conditioning dense layers collapsed into ONE matmul -------
    # emb_terms[:, i*Hs : i*Hs+H] is embeds[i](embed); the tail segment
    # starting at num_hidden*Hs is embeds[-1](embed).
    emb_terms = mm(embed, embcat_wT_ref[...]) + embcat_b_ref[...]

    gmat_div = gmat_div_ref[...]      # [H, G]  (group indicator / group size)
    gmatT = gmatT_ref[...]            # [G, H]

    def group_norm(h, layer):
        # Fused per-row group statistics: stack [h, h*h] along the sublane
        # (batch) axis so mean and E[x^2] share one pair of tiny f32 matmuls.
        stacked = jnp.concatenate([h, h * h], axis=0)                     # [2TM,H]
        stats_g = jnp.dot(stacked, gmat_div, preferred_element_type=f32)  # [2TM,G]
        stats_c = jnp.dot(stats_g, gmatT, preferred_element_type=f32)     # [2TM,H]
        mean_c = stats_c[:TM, :]
        msq_c = stats_c[TM:, :]
        var_c = jnp.maximum(msq_c - mean_c * mean_c, 0.0)
        y = (h - mean_c) * lax.rsqrt(var_c + eps)
        return y * gamma_ref[layer] + beta_ref[layer]

    # --- hidden layer 0: [TM, D] @ [D, H] -------------------------------------
    h = mm(x_ref[...], lin0_wT_ref[...]) + lin0_b_ref[...] + emb_terms[:, 0:H]
    if normalize:
        h = group_norm(h, 0)
    h = swish(h)

    # --- middle hidden layers: [TM, H] @ [H, H] -------------------------------
    # Static unroll: num_hidden is small; for deep networks switch to
    # lax.fori_loop / a layer grid axis to bound live ranges.
    for i in range(1, num_hidden):
        h = (mm(h, linmid_wT_ref[i - 1]) + linmid_b_ref[i - 1]
             + emb_terms[:, i * Hs:i * Hs + H])
        if normalize:
            h = group_norm(h, i)
        h = swish(h)

    # --- output layer + score scaling ----------------------------------------
    h = (mm(h, linlast_wT_ref[...]) + linlast_b_ref[...]
         + emb_terms[:, num_hidden * Hs:num_hidden * Hs + D])
    out_ref[...] = h * inv_std_ref[...]


# ----------------------------------------------------------------------------
# Parameters (PyTorch MLPScoreNet layout) + forward wrapper
# ----------------------------------------------------------------------------
def init_params(key, *, im_width, im_height, hidden_dim, num_hidden,
                embed_dim=256):
    D = im_width * im_height
    H = hidden_dim
    E = embed_dim
    keys = iter(jax.random.split(key, 64))

    def lin(out_d, in_d):
        w = (jax.random.normal(next(keys), (out_d, in_d), jnp.float32)
             / np.sqrt(float(in_d)))
        b = jax.random.normal(next(keys), (out_d,), jnp.float32) * 0.01
        return w, b

    p = {}
    p['W_fourier'] = jax.random.normal(next(keys), (E // 2,), jnp.float32) * 30.0
    p['embed_w'], p['embed_b'] = lin(E, E)

    lin_w, lin_b = [], []
    w, b = lin(H, D); lin_w.append(w); lin_b.append(b)          # linears[0]
    for _ in range(num_hidden - 1):                             # linears[1..]
        w, b = lin(H, H); lin_w.append(w); lin_b.append(b)
    w, b = lin(D, H); lin_w.append(w); lin_b.append(b)          # linears[-1]
    p['lin_w'], p['lin_b'] = lin_w, lin_b

    emb_w, emb_b = [], []
    for _ in range(num_hidden):                                 # embeds[0..n-1]
        w, b = lin(H, E); emb_w.append(w); emb_b.append(b)
    w, b = lin(D, E); emb_w.append(w); emb_b.append(b)          # embeds[-1]
    p['emb_w'], p['emb_b'] = emb_w, emb_b

    p['gn_g'] = [jnp.ones((H,), jnp.float32) for _ in range(num_hidden)]
    p['gn_b'] = [jnp.zeros((H,), jnp.float32) for _ in range(num_hidden)]
    return p


def mlp_scorenet_forward(params, x, t, *, num_groups=32, normalize=True,
                         eps=1e-5):
    N = x.shape[0]
    f32, bf16 = jnp.float32, jnp.bfloat16

    # x / fourier only ever hit bf16 MXU matmuls -> ship them in bf16.
    x_flat = x.reshape(N, -1).astype(bf16)
    D = x_flat.shape[1]
    num_hidden = len(params['gn_g'])
    H = params['lin_w'][0].shape[0]
    E = params['embed_w'].shape[0]
    G = num_groups
    assert H % G == 0
    cg = H // G

    # Time features / score scale: tiny elementwise work, done in plain JAX.
    x_proj = t[:, None] * params['W_fourier'][None, :] * (2.0 * np.pi)
    fourier = jnp.concatenate([jnp.sin(x_proj), jnp.cos(x_proj)],
                              axis=-1).astype(bf16)                  # [N, E]
    inv_std = (1.0 / marginal_prob_std(t)).reshape(N, 1).astype(f32)

    # Batch tiling: multiple of 16 rows (bf16 sublane packing); prefer
    # 256-row tiles (MXU-friendly) once the batch is large enough.
    tile_n = 256 if N >= 256 else _round_up(N, 16)
    N_pad = _round_up(N, tile_n)
    if N_pad != N:
        x_flat = jnp.pad(x_flat, ((0, N_pad - N), (0, 0)))
        fourier = jnp.pad(fourier, ((0, N_pad - N), (0, 0)))
        inv_std = jnp.pad(inv_std, ((0, N_pad - N), (0, 0)))

    # Pre-transposed weights (x @ W^T form), bf16 at the MXU boundary;
    # biases / norm affine / all normalization math stay f32.
    embed_wT = params['embed_w'].T.astype(bf16)                     # [E, E]
    embed_b = params['embed_b'].reshape(1, E).astype(f32)

    lin0_wT = params['lin_w'][0].T.astype(bf16)                     # [D, H]
    lin0_b = params['lin_b'][0].reshape(1, H).astype(f32)
    if num_hidden > 1:
        linmid_wT = jnp.stack(
            [params['lin_w'][i].T for i in range(1, num_hidden)]).astype(bf16)
        linmid_b = jnp.stack(
            [params['lin_b'][i].reshape(1, H) for i in range(1, num_hidden)]
        ).astype(f32)
    else:  # dummy (never read in-kernel when num_hidden == 1)
        linmid_wT = jnp.zeros((1, H, H), bf16)
        linmid_b = jnp.zeros((1, 1, H), f32)
    linlast_wT = params['lin_w'][num_hidden].T.astype(bf16)         # [H, D]
    linlast_b = params['lin_b'][num_hidden].reshape(1, D).astype(f32)

    # Collapse all `embeds[i]` dense layers into one concatenated matmul.
    # Each segment is padded to a 128-lane boundary so the in-kernel slices
    # start lane-tile aligned for any H / D.
    Hs = _round_up(H, 128)
    Ds = _round_up(D, 128)
    seg_w, seg_b = [], []
    for i in range(num_hidden + 1):
        w = params['emb_w'][i].T                       # [E, H] or [E, D]
        b = params['emb_b'][i].reshape(1, -1)
        width = Hs if i < num_hidden else Ds
        pad = width - w.shape[1]
        if pad:
            w = jnp.pad(w, ((0, 0), (0, pad)))
            b = jnp.pad(b, ((0, 0), (0, pad)))
        seg_w.append(w)
        seg_b.append(b)
    embcat_wT = jnp.concatenate(seg_w, axis=1).astype(bf16)   # [E, nH*Hs + Ds]
    embcat_b = jnp.concatenate(seg_b, axis=1).astype(f32)

    gamma = jnp.stack([g.reshape(1, H) for g in params['gn_g']]).astype(f32)
    beta = jnp.stack([b.reshape(1, H) for b in params['gn_b']]).astype(f32)

    # Group-indicator matrices for in-kernel GroupNorm statistics.
    gmat = (jnp.arange(H)[:, None] // cg ==
            jnp.arange(G)[None, :]).astype(f32)                     # [H, G]
    gmat_div = gmat * (1.0 / float(cg))
    gmatT = gmat.T

    batch_inputs = (x_flat, fourier, inv_std)
    weight_inputs = (embed_wT, embed_b,
                     lin0_wT, lin0_b,
                     linmid_wT, linmid_b,
                     linlast_wT, linlast_b,
                     embcat_wT, embcat_b,
                     gamma, beta,
                     gmat_div, gmatT)

    kernel = functools.partial(
        _mlp_scorenet_kernel,
        num_hidden=num_hidden, hidden_dim=H, out_dim=D,
        seg_stride=Hs, batch_tile=tile_n,
        eps=float(eps), normalize=bool(normalize))

    def batch_spec(a):
        nd = a.ndim
        return pl.BlockSpec((tile_n,) + a.shape[1:],
                            lambda i, nd=nd: (i,) + (0,) * (nd - 1))

    def resident_spec(a):
        nd = a.ndim
        return pl.BlockSpec(a.shape, lambda i, nd=nd: (0,) * nd)

    out = pl.pallas_call(
        kernel,
        out_shape=jax.ShapeDtypeStruct((N_pad, D), f32),
        grid=(N_pad // tile_n,),
        in_specs=([batch_spec(a) for a in batch_inputs]
                  + [resident_spec(a) for a in weight_inputs]),
        out_specs=pl.BlockSpec((tile_n, D), lambda i: (i, 0)),
        compiler_params=pltpu.CompilerParams(
            dimension_semantics=("parallel",),          # megacore on v7x
            vmem_limit_bytes=64 * 1024 * 1024),
    )(*batch_inputs, *weight_inputs)
    return out[:N].reshape(x.shape)


if __name__ == "__main__":
    key = jax.random.PRNGKey(0)
    kp, kx, kt = jax.random.split(key, 3)

    IM_W = IM_H = 16           # flattened image dim = 256
    HIDDEN = 128               # divisible by GroupNorm group size 32
    NUM_HIDDEN = 3
    EMBED = 256
    N = 2

    params = init_params(kp, im_width=IM_W, im_height=IM_H,
                         hidden_dim=HIDDEN, num_hidden=NUM_HIDDEN,
                         embed_dim=EMBED)

    x = jax.random.normal(kx, (N, 1, IM_H, IM_W), jnp.float32)
    t = jax.random.uniform(kt, (N,), jnp.float32, 1e-3, 1.0)

    fwd = jax.jit(mlp_scorenet_forward)
    out = fwd(params, x, t)
    out = jax.block_until_ready(out)

    assert out.shape == x.shape, out.shape
    assert bool(jnp.all(jnp.isfinite(out)))
    print("KERNEL_OK")
</pallas_src>

<mosaic_0001>
module attributes {stable_mosaic.version = 11 : i64} {
  func.func @_mlp_scorenet_kernel(%arg0: i32, %arg1: memref<16x256xbf16, #tpu.memory_space<vmem>>, %arg2: memref<16x256xbf16, #tpu.memory_space<vmem>>, %arg3: memref<16x1xf32, #tpu.memory_space<vmem>>, %arg4: memref<256x256xbf16, #tpu.memory_space<vmem>>, %arg5: memref<1x256xf32, #tpu.memory_space<vmem>>, %arg6: memref<256x128xbf16, #tpu.memory_space<vmem>>, %arg7: memref<1x128xf32, #tpu.memory_space<vmem>>, %arg8: memref<2x128x128xbf16, #tpu.memory_space<vmem>>, %arg9: memref<2x1x128xf32, #tpu.memory_space<vmem>>, %arg10: memref<128x256xbf16, #tpu.memory_space<vmem>>, %arg11: memref<1x256xf32, #tpu.memory_space<vmem>>, %arg12: memref<256x640xbf16, #tpu.memory_space<vmem>>, %arg13: memref<1x640xf32, #tpu.memory_space<vmem>>, %arg14: memref<3x1x128xf32, #tpu.memory_space<vmem>>, %arg15: memref<3x1x128xf32, #tpu.memory_space<vmem>>, %arg16: memref<128x32xf32, #tpu.memory_space<vmem>>, %arg17: memref<32x128xf32, #tpu.memory_space<vmem>>, %arg18: memref<16x256xf32, #tpu.memory_space<vmem>>) attributes {dimension_semantics = [#tpu.dimension_semantics<parallel>], iteration_bounds = array<i64: 1>, scalar_prefetch = 0 : i64, scratch_operands = 0 : i64, tpu.core_type = #tpu.core_type<tc>, window_params = [{transform_indices = @transform_0, window_bounds = array<i64: 16, 256>}, {transform_indices = @transform_1, window_bounds = array<i64: 16, 256>}, {transform_indices = @transform_2, window_bounds = array<i64: 16, 1>}, {pipeline_mode = #tpu.pipeline_mode<synchronous>, transform_indices = @transform_3, window_bounds = array<i64: 256, 256>}, {pipeline_mode = #tpu.pipeline_mode<synchronous>, transform_indices = @transform_4, window_bounds = array<i64: 1, 256>}, {pipeline_mode = #tpu.pipeline_mode<synchronous>, transform_indices = @transform_5, window_bounds = array<i64: 256, 128>}, {pipeline_mode = #tpu.pipeline_mode<synchronous>, transform_indices = @transform_6, window_bounds = array<i64: 1, 128>}, {pipeline_mode = #tpu.pipeline_mode<synchronous>, transform_indices = @transform_7, window_bounds = array<i64: 2, 128, 128>}, {pipeline_mode = #tpu.pipeline_mode<synchronous>, transform_indices = @transform_8, window_bounds = array<i64: 2, 1, 128>}, {pipeline_mode = #tpu.pipeline_mode<synchronous>, transform_indices = @transform_9, window_bounds = array<i64: 128, 256>}, {pipeline_mode = #tpu.pipeline_mode<synchronous>, transform_indices = @transform_10, window_bounds = array<i64: 1, 256>}, {pipeline_mode = #tpu.pipeline_mode<synchronous>, transform_indices = @transform_11, window_bounds = array<i64: 256, 640>}, {pipeline_mode = #tpu.pipeline_mode<synchronous>, transform_indices = @transform_12, window_bounds = array<i64: 1, 640>}, {pipeline_mode = #tpu.pipeline_mode<synchronous>, transform_indices = @transform_13, window_bounds = array<i64: 3, 1, 128>}, {pipeline_mode = #tpu.pipeline_mode<synchronous>, transform_indices = @transform_14, window_bounds = array<i64: 3, 1, 128>}, {pipeline_mode = #tpu.pipeline_mode<synchronous>, transform_indices = @transform_15, window_bounds = array<i64: 128, 32>}, {pipeline_mode = #tpu.pipeline_mode<synchronous>, transform_indices = @transform_16, window_bounds = array<i64: 32, 128>}, {transform_indices = @transform_17, window_bounds = array<i64: 16, 256>}]} {
    %c0 = arith.constant 0 : index
    %c0_0 = arith.constant 0 : index
    %0 = vector.load %arg2[%c0, %c0_0] : memref<16x256xbf16, #tpu.memory_space<vmem>>, vector<16x256xbf16>
    %c0_1 = arith.constant 0 : index
    %c0_2 = arith.constant 0 : index
    %1 = vector.load %arg4[%c0_1, %c0_2] : memref<256x256xbf16, #tpu.memory_space<vmem>>, vector<256x256xbf16>
    %cst = arith.constant dense<0.000000e+00> : vector<16x256xf32>
    %2 = tpu.matmul %0, %1, %cst {dimension_numbers = #tpu.dot_dimension_numbers<[1], [0], [0], [1], [0, 0, 1, 1], [], []>} : vector<16x256xbf16>, vector<256x256xbf16>, vector<16x256xf32> -> vector<16x256xf32>
    %c0_3 = arith.constant 0 : index
    %c0_4 = arith.constant 0 : index
    %3 = vector.load %arg5[%c0_3, %c0_4] : memref<1x256xf32, #tpu.memory_space<vmem>>, vector<1x256xf32>
    %4 = vector.broadcast %3 : vector<1x256xf32> to vector<16x256xf32>
    %5 = arith.addf %2, %4 : vector<16x256xf32>
    %6 = arith.negf %5 : vector<16x256xf32>
    %7 = math.exp %6 : vector<16x256xf32>
    %cst_5 = arith.constant 1.000000e+00 : f32
    %8 = vector.broadcast %cst_5 : f32 to vector<16x256xf32>
    %9 = arith.addf %8, %7 : vector<16x256xf32>
    %10 = arith.divf %8, %9 : vector<16x256xf32>
    %11 = arith.mulf %5, %10 : vector<16x256xf32>
    %c0_6 = arith.constant 0 : index
    %c0_7 = arith.constant 0 : index
    %12 = vector.load %arg12[%c0_6, %c0_7] : memref<256x640xbf16, #tpu.memory_space<vmem>>, vector<256x640xbf16>
    %13 = arith.truncf %11 : vector<16x256xf32> to vector<16x256xbf16>
    %cst_8 = arith.constant dense<0.000000e+00> : vector<16x640xf32>
    %14 = tpu.matmul %13, %12, %cst_8 {dimension_numbers = #tpu.dot_dimension_numbers<[1], [0], [0], [1], [0, 0, 1, 1], [], []>} : vector<16x256xbf16>, vector<256x640xbf16>, vector<16x640xf32> -> vector<16x640xf32>
    %c0_9 = arith.constant 0 : index
    %c0_10 = arith.constant 0 : index
    %15 = vector.load %arg13[%c0_9, %c0_10] : memref<1x640xf32, #tpu.memory_space<vmem>>, vector<1x640xf32>
    %16 = vector.broadcast %15 : vector<1x640xf32> to vector<16x640xf32>
    %17 = arith.addf %14, %16 : vector<16x640xf32>
    %c0_11 = arith.constant 0 : index
    %c0_12 = arith.constant 0 : index
    %18 = vector.load %arg16[%c0_11, %c0_12] : memref<128x32xf32, #tpu.memory_space<vmem>>, vector<128x32xf32>
    %c0_13 = arith.constant 0 : index
    %c0_14 = arith.constant 0 : index
    %19 = vector.load %arg17[%c0_13, %c0_14] : memref<32x128xf32, #tpu.memory_space<vmem>>, vector<32x128xf32>
    %c0_15 = arith.constant 0 : index
    %c0_16 = arith.constant 0 : index
    %20 = vector.load %arg1[%c0_15, %c0_16] : memref<16x256xbf16, #tpu.memory_space<vmem>>, vector<16x256xbf16>
    %c0_17 = arith.constant 0 : index
    %c0_18 = arith.constant 0 : index
    %21 = vector.load %arg6[%c0_17, %c0_18] : memref<256x128xbf16, #tpu.memory_space<vmem>>, vector<256x128xbf16>
    %cst_19 = arith.constant dense<0.000000e+00> : vector<16x128xf32>
    %22 = tpu.matmul %20, %21, %cst_19 {dimension_numbers = #tpu.dot_dimension_numbers<[1], [0], [0], [1], [0, 0, 1, 1], [], []>} : vector<16x256xbf16>, vector<256x128xbf16>, vector<16x128xf32> -> vector<16x128xf32>
    %c0_20 = arith.constant 0 : index
    %c0_21 = arith.constant 0 : index
    %23 = vector.load %arg7[%c0_20, %c0_21] : memref<1x128xf32, #tpu.memory_space<vmem>>, vector<1x128xf32>
    %24 = vector.broadcast %23 : vector<1x128xf32> to vector<16x128xf32>
    %25 = arith.addf %22, %24 : vector<16x128xf32>
    %26 = vector.extract_strided_slice %17 {offsets = [0, 0], sizes = [16, 128], strides = [1, 1]} : vector<16x640xf32> to vector<16x128xf32>
    %27 = arith.addf %25, %26 : vector<16x128xf32>
    %28 = arith.mulf %27, %27 : vector<16x128xf32>
    %29 = tpu.concatenate %27, %28 in 0 : vector<16x128xf32>, vector<16x128xf32> -> vector<32x128xf32>
    %cst_22 = arith.constant dense<0.000000e+00> : vector<32x32xf32>
    %30 = tpu.matmul %29, %18, %cst_22 {dimension_numbers = #tpu.dot_dimension_numbers<[1], [0], [0], [1], [0, 0, 1, 1], [], []>} : vector<32x128xf32>, vector<128x32xf32>, vector<32x32xf32> -> vector<32x32xf32>
    %cst_23 = arith.constant dense<0.000000e+00> : vector<32x128xf32>
    %31 = tpu.matmul %30, %19, %cst_23 {dimension_numbers = #tpu.dot_dimension_numbers<[1], [0], [0], [1], [0, 0, 1, 1], [], []>} : vector<32x32xf32>, vector<32x128xf32>, vector<32x128xf32> -> vector<32x128xf32>
    %32 = vector.extract_strided_slice %31 {offsets = [0, 0], sizes = [16, 128], strides = [1, 1]} : vector<32x128xf32> to vector<16x128xf32>
    %33 = vector.extract_strided_slice %31 {offsets = [16, 0], sizes = [16, 128], strides = [1, 1]} : vector<32x128xf32> to vector<16x128xf32>
    %34 = arith.mulf %32, %32 : vector<16x128xf32>
    %35 = arith.subf %33, %34 : vector<16x128xf32>
    %cst_24 = arith.constant 0.000000e+00 : f32
    %36 = vector.broadcast %cst_24 : f32 to vector<16x128xf32>
    %37 = arith.maximumf %35, %36 : vector<16x128xf32>
    %38 = arith.subf %27, %32 : vector<16x128xf32>
    %cst_25 = arith.constant 9.99999974E-6 : f32
    %39 = vector.broadcast %cst_25 : f32 to vector<16x128xf32>
    %40 = arith.addf %37, %39 : vector<16x128xf32>
    %41 = math.rsqrt %40 : vector<16x128xf32>
    %42 = arith.mulf %38, %41 : vector<16x128xf32>
    %c0_26 = arith.constant 0 : index
    %c0_27 = arith.constant 0 : index
    %c0_28 = arith.constant 0 : index
    %43 = vector.load %arg14[%c0_26, %c0_27, %c0_28] : memref<3x1x128xf32, #tpu.memory_space<vmem>>, vector<1x1x128xf32>
    %44 = vector.shape_cast %43 : vector<1x1x128xf32> to vector<1x128xf32>
    %45 = vector.broadcast %44 : vector<1x128xf32> to vector<16x128xf32>
    %46 = arith.mulf %42, %45 : vector<16x128xf32>
    %c0_29 = arith.constant 0 : index
    %c0_30 = arith.constant 0 : index
    %c0_31 = arith.constant 0 : index
    %47 = vector.load %arg15[%c0_29, %c0_30, %c0_31] : memref<3x1x128xf32, #tpu.memory_space<vmem>>, vector<1x1x128xf32>
    %48 = vector.shape_cast %47 : vector<1x1x128xf32> to vector<1x128xf32>
    %49 = vector.broadcast %48 : vector<1x128xf32> to vector<16x128xf32>
    %50 = arith.addf %46, %49 : vector<16x128xf32>
    %51 = arith.negf %50 : vector<16x128xf32>
    %52 = math.exp %51 : vector<16x128xf32>
    %cst_32 = arith.constant 1.000000e+00 : f32
    %53 = vector.broadcast %cst_32 : f32 to vector<16x128xf32>
    %54 = arith.addf %53, %52 : vector<16x128xf32>
    %55 = arith.divf %53, %54 : vector<16x128xf32>
    %56 = arith.mulf %50, %55 : vector<16x128xf32>
    %c0_33 = arith.constant 0 : index
    %c0_34 = arith.constant 0 : index
    %c0_35 = arith.constant 0 : index
    %57 = vector.load %arg8[%c0_33, %c0_34, %c0_35] : memref<2x128x128xbf16, #tpu.memory_space<vmem>>, vector<1x128x128xbf16>
    %58 = vector.shape_cast %57 : vector<1x128x128xbf16> to vector<128x128xbf16>
    %59 = arith.truncf %56 : vector<16x128xf32> to vector<16x128xbf16>
    %cst_36 = arith.constant dense<0.000000e+00> : vector<16x128xf32>
    %60 = tpu.matmul %59, %58, %cst_36 {dimension_numbers = #tpu.dot_dimension_numbers<[1], [0], [0], [1], [0, 0, 1, 1], [], []>} : vector<16x128xbf16>, vector<128x128xbf16>, vector<16x128xf32> -> vector<16x128xf32>
    %c0_37 = arith.constant 0 : index
    %c0_38 = arith.constant 0 : index
    %c0_39 = arith.constant 0 : index
    %61 = vector.load %arg9[%c0_37, %c0_38, %c0_39] : memref<2x1x128xf32, #tpu.memory_space<vmem>>, vector<1x1x128xf32>
    %62 = vector.shape_cast %61 : vector<1x1x128xf32> to vector<1x128xf32>
    %63 = vector.broadcast %62 : vector<1x128xf32> to vector<16x128xf32>
    %64 = arith.addf %60, %63 : vector<16x128xf32>
    %65 = vector.extract_strided_slice %17 {offsets = [0, 128], sizes = [16, 128], strides = [1, 1]} : vector<16x640xf32> to vector<16x128xf32>
    %66 = arith.addf %64, %65 : vector<16x128xf32>
    %67 = arith.mulf %66, %66 : vector<16x128xf32>
    %68 = tpu.concatenate %66, %67 in 0 : vector<16x128xf32>, vector<16x128xf32> -> vector<32x128xf32>
    %cst_40 = arith.constant dense<0.000000e+00> : vector<32x32xf32>
    %69 = tpu.matmul %68, %18, %cst_40 {dimension_numbers = #tpu.dot_dimension_numbers<[1], [0], [0], [1], [0, 0, 1, 1], [], []>} : vector<32x128xf32>, vector<128x32xf32>, vector<32x32xf32> -> vector<32x32xf32>
    %cst_41 = arith.constant dense<0.000000e+00> : vector<32x128xf32>
    %70 = tpu.matmul %69, %19, %cst_41 {dimension_numbers = #tpu.dot_dimension_numbers<[1], [0], [0], [1], [0, 0, 1, 1], [], []>} : vector<32x32xf32>, vector<32x128xf32>, vector<32x128xf32> -> vector<32x128xf32>
    %71 = vector.extract_strided_slice %70 {offsets = [0, 0], sizes = [16, 128], strides = [1, 1]} : vector<32x128xf32> to vector<16x128xf32>
    %72 = vector.extract_strided_slice %70 {offsets = [16, 0], sizes = [16, 128], strides = [1, 1]} : vector<32x128xf32> to vector<16x128xf32>
    %73 = arith.mulf %71, %71 : vector<16x128xf32>
    %74 = arith.subf %72, %73 : vector<16x128xf32>
    %cst_42 = arith.constant 0.000000e+00 : f32
    %75 = vector.broadcast %cst_42 : f32 to vector<16x128xf32>
    %76 = arith.maximumf %74, %75 : vector<16x128xf32>
    %77 = arith.subf %66, %71 : vector<16x128xf32>
    %cst_43 = arith.constant 9.99999974E-6 : f32
    %78 = vector.broadcast %cst_43 : f32 to vector<16x128xf32>
    %79 = arith.addf %76, %78 : vector<16x128xf32>
    %80 = math.rsqrt %79 : vector<16x128xf32>
    %81 = arith.mulf %77, %80 : vector<16x128xf32>
    %c1 = arith.constant 1 : index
    %c0_44 = arith.constant 0 : index
    %c0_45 = arith.constant 0 : index
    %82 = vector.load %arg14[%c1, %c0_44, %c0_45] : memref<3x1x128xf32, #tpu.memory_space<vmem>>, vector<1x1x128xf32>
    %83 = vector.shape_cast %82 : vector<1x1x128xf32> to vector<1x128xf32>
    %84 = vector.broadcast %83 : vector<1x128xf32> to vector<16x128xf32>
    %85 = arith.mulf %81, %84 : vector<16x128xf32>
    %c1_46 = arith.constant 1 : index
    %c0_47 = arith.constant 0 : index
    %c0_48 = arith.constant 0 : index
    %86 = vector.load %arg15[%c1_46, %c0_47, %c0_48] : memref<3x1x128xf32, #tpu.memory_space<vmem>>, vector<1x1x128xf32>
    %87 = vector.shape_cast %86 : vector<1x1x128xf32> to vector<1x128xf32>
    %88 = vector.broadcast %87 : vector<1x128xf32> to vector<16x128xf32>
    %89 = arith.addf %85, %88 : vector<16x128xf32>
    %90 = arith.negf %89 : vector<16x128xf32>
    %91 = math.exp %90 : vector<16x128xf32>
    %cst_49 = arith.constant 1.000000e+00 : f32
    %92 = vector.broadcast %cst_49 : f32 to vector<16x128xf32>
    %93 = arith.addf %92, %91 : vector<16x128xf32>
    %94 = arith.divf %92, %93 : vector<16x128xf32>
    %95 = arith.mulf %89, %94 : vector<16x128xf32>
    %c1_50 = arith.constant 1 : index
    %c0_51 = arith.constant 0 : index
    %c0_52 = arith.constant 0 : index
    %96 = vector.load %arg8[%c1_50, %c0_51, %c0_52] : memref<2x128x128xbf16, #tpu.memory_space<vmem>>, vector<1x128x128xbf16>
    %97 = vector.shape_cast %96 : vector<1x128x128xbf16> to vector<128x128xbf16>
    %98 = arith.truncf %95 : vector<16x128xf32> to vector<16x128xbf16>
    %cst_53 = arith.constant dense<0.000000e+00> : vector<16x128xf32>
    %99 = tpu.matmul %98, %97, %cst_53 {dimension_numbers = #tpu.dot_dimension_numbers<[1], [0], [0], [1], [0, 0, 1, 1], [], []>} : vector<16x128xbf16>, vector<128x128xbf16>, vector<16x128xf32> -> vector<16x128xf32>
    %c1_54 = arith.constant 1 : index
    %c0_55 = arith.constant 0 : index
    %c0_56 = arith.constant 0 : index
    %100 = vector.load %arg9[%c1_54, %c0_55, %c0_56] : memref<2x1x128xf32, #tpu.memory_space<vmem>>, vector<1x1x128xf32>
    %101 = vector.shape_cast %100 : vector<1x1x128xf32> to vector<1x128xf32>
    %102 = vector.broadcast %101 : vector<1x128xf32> to vector<16x128xf32>
    %103 = arith.addf %99, %102 : vector<16x128xf32>
    %104 = vector.extract_strided_slice %17 {offsets = [0, 256], sizes = [16, 128], strides = [1, 1]} : vector<16x640xf32> to vector<16x128xf32>
    %105 = arith.addf %103, %104 : vector<16x128xf32>
    %106 = arith.mulf %105, %105 : vector<16x128xf32>
    %107 = tpu.concatenate %105, %106 in 0 : vector<16x128xf32>, vector<16x128xf32> -> vector<32x128xf32>
    %cst_57 = arith.constant dense<0.000000e+00> : vector<32x32xf32>
    %108 = tpu.matmul %107, %18, %cst_57 {dimension_numbers = #tpu.dot_dimension_numbers<[1], [0], [0], [1], [0, 0, 1, 1], [], []>} : vector<32x128xf32>, vector<128x32xf32>, vector<32x32xf32> -> vector<32x32xf32>
    %cst_58 = arith.constant dense<0.000000e+00> : vector<32x128xf32>
    %109 = tpu.matmul %108, %19, %cst_58 {dimension_numbers = #tpu.dot_dimension_numbers<[1], [0], [0], [1], [0, 0, 1, 1], [], []>} : vector<32x32xf32>, vector<32x128xf32>, vector<32x128xf32> -> vector<32x128xf32>
    %110 = vector.extract_strided_slice %109 {offsets = [0, 0], sizes = [16, 128], strides = [1, 1]} : vector<32x128xf32> to vector<16x128xf32>
    %111 = vector.extract_strided_slice %109 {offsets = [16, 0], sizes = [16, 128], strides = [1, 1]} : vector<32x128xf32> to vector<16x128xf32>
    %112 = arith.mulf %110, %110 : vector<16x128xf32>
    %113 = arith.subf %111, %112 : vector<16x128xf32>
    %cst_59 = arith.constant 0.000000e+00 : f32
    %114 = vector.broadcast %cst_59 : f32 to vector<16x128xf32>
    %115 = arith.maximumf %113, %114 : vector<16x128xf32>
    %116 = arith.subf %105, %110 : vector<16x128xf32>
    %cst_60 = arith.constant 9.99999974E-6 : f32
    %117 = vector.broadcast %cst_60 : f32 to vector<16x128xf32>
    %118 = arith.addf %115, %117 : vector<16x128xf32>
    %119 = math.rsqrt %118 : vector<16x128xf32>
    %120 = arith.mulf %116, %119 : vector<16x128xf32>
    %c2 = arith.constant 2 : index
    %c0_61 = arith.constant 0 : index
    %c0_62 = arith.constant 0 : index
    %121 = vector.load %arg14[%c2, %c0_61, %c0_62] : memref<3x1x128xf32, #tpu.memory_space<vmem>>, vector<1x1x128xf32>
    %122 = vector.shape_cast %121 : vector<1x1x128xf32> to vector<1x128xf32>
    %123 = vector.broadcast %122 : vector<1x128xf32> to vector<16x128xf32>
    %124 = arith.mulf %120, %123 : vector<16x128xf32>
    %c2_63 = arith.constant 2 : index
    %c0_64 = arith.constant 0 : index
    %c0_65 = arith.constant 0 : index
    %125 = vector.load %arg15[%c2_63, %c0_64, %c0_65] : memref<3x1x128xf32, #tpu.memory_space<vmem>>, vector<1x1x128xf32>
    %126 = vector.shape_cast %125 : vector<1x1x128xf32> to vector<1x128xf32>
    %127 = vector.broadcast %126 : vector<1x128xf32> to vector<16x128xf32>
    %128 = arith.addf %124, %127 : vector<16x128xf32>
    %129 = arith.negf %128 : vector<16x128xf32>
    %130 = math.exp %129 : vector<16x128xf32>
    %cst_66 = arith.constant 1.000000e+00 : f32
    %131 = vector.broadcast %cst_66 : f32 to vector<16x128xf32>
    %132 = arith.addf %131, %130 : vector<16x128xf32>
    %133 = arith.divf %131, %132 : vector<16x128xf32>
    %134 = arith.mulf %128, %133 : vector<16x128xf32>
    %c0_67 = arith.constant 0 : index
    %c0_68 = arith.constant 0 : index
    %135 = vector.load %arg10[%c0_67, %c0_68] : memref<128x256xbf16, #tpu.memory_space<vmem>>, vector<128x256xbf16>
    %136 = arith.truncf %134 : vector<16x128xf32> to vector<16x128xbf16>
    %cst_69 = arith.constant dense<0.000000e+00> : vector<16x256xf32>
    %137 = tpu.matmul %136, %135, %cst_69 {dimension_numbers = #tpu.dot_dimension_numbers<[1], [0], [0], [1], [0, 0, 1, 1], [], []>} : vector<16x128xbf16>, vector<128x256xbf16>, vector<16x256xf32> -> vector<16x256xf32>
    %c0_70 = arith.constant 0 : index
    %c0_71 = arith.constant 0 : index
    %138 = vector.load %arg11[%c0_70, %c0_71] : memref<1x256xf32, #tpu.memory_space<vmem>>, vector<1x256xf32>
    %139 = vector.broadcast %138 : vector<1x256xf32> to vector<16x256xf32>
    %140 = arith.addf %137, %139 : vector<16x256xf32>
    %141 = vector.extract_strided_slice %17 {offsets = [0, 384], sizes = [16, 256], strides = [1, 1]} : vector<16x640xf32> to vector<16x256xf32>
    %142 = arith.addf %140, %141 : vector<16x256xf32>
    %c0_72 = arith.constant 0 : index
    %c0_73 = arith.constant 0 : index
    %143 = vector.load %arg3[%c0_72, %c0_73] : memref<16x1xf32, #tpu.memory_space<vmem>>, vector<16x1xf32>
    %144 = vector.broadcast %143 : vector<16x1xf32> to vector<16x256xf32>
    %145 = arith.mulf %142, %144 : vector<16x256xf32>
    %c0_74 = arith.constant 0 : index
    %c0_75 = arith.constant 0 : index
    %146 = vector.load %arg18[%c0_74, %c0_75] : memref<16x256xf32, #tpu.memory_space<vmem>>, vector<16x256xf32>
    tpu.vector_store %arg18[%c0_74, %c0_75], %145 {strides = array<i32>} : memref<16x256xf32, #tpu.memory_space<vmem>>, vector<16x256xf32>,
    return
  }
  func.func @transform_0(%arg0: i32) -> (i32, i32) {
    %c0_i32 = arith.constant 0 : i32
    %c0_i32_0 = arith.constant 0 : i32
    return %arg0, %c0_i32 : i32, i32
  }
  func.func @transform_1(%arg0: i32) -> (i32, i32) {
    %c0_i32 = arith.constant 0 : i32
    %c0_i32_0 = arith.constant 0 : i32
    return %arg0, %c0_i32 : i32, i32
  }
  func.func @transform_2(%arg0: i32) -> (i32, i32) {
    %c0_i32 = arith.constant 0 : i32
    %c0_i32_0 = arith.constant 0 : i32
    return %arg0, %c0_i32 : i32, i32
  }
  func.func @transform_3(%arg0: i32) -> (i32, i32) {
    %c0_i32 = arith.constant 0 : i32
    %c0_i32_0 = arith.constant 0 : i32
    %c0_i32_1 = arith.constant 0 : i32
    return %c0_i32, %c0_i32_0 : i32, i32
  }
  func.func @transform_4(%arg0: i32) -> (i32, i32) {
    %c0_i32 = arith.constant 0 : i32
    %c0_i32_0 = arith.constant 0 : i32
    %c0_i32_1 = arith.constant 0 : i32
    return %c0_i32, %c0_i32_0 : i32, i32
  }
  func.func @transform_5(%arg0: i32) -> (i32, i32) {
    %c0_i32 = arith.constant 0 : i32
    %c0_i32_0 = arith.constant 0 : i32
    %c0_i32_1 = arith.constant 0 : i32
    return %c0_i32, %c0_i32_0 : i32, i32
  }
  func.func @transform_6(%arg0: i32) -> (i32, i32) {
    %c0_i32 = arith.constant 0 : i32
    %c0_i32_0 = arith.constant 0 : i32
    %c0_i32_1 = arith.constant 0 : i32
    return %c0_i32, %c0_i32_0 : i32, i32
  }
  func.func @transform_7(%arg0: i32) -> (i32, i32, i32) {
    %c0_i32 = arith.constant 0 : i32
    %c0_i32_0 = arith.constant 0 : i32
    %c0_i32_1 = arith.constant 0 : i32
    %c0_i32_2 = arith.constant 0 : i32
    return %c0_i32, %c0_i32_0, %c0_i32_1 : i32, i32, i32
  }
  func.func @transform_8(%arg0: i32) -> (i32, i32, i32) {
    %c0_i32 = arith.constant 0 : i32
    %c0_i32_0 = arith.constant 0 : i32
    %c0_i32_1 = arith.constant 0 : i32
    %c0_i32_2 = arith.constant 0 : i32
    return %c0_i32, %c0_i32_0, %c0_i32_1 : i32, i32, i32
  }
  func.func @transform_9(%arg0: i32) -> (i32, i32) {
    %c0_i32 = arith.constant 0 : i32
    %c0_i32_0 = arith.constant 0 : i32
    %c0_i32_1 = arith.constant 0 : i32
    return %c0_i32, %c0_i32_0 : i32, i32
  }
  func.func @transform_10(%arg0: i32) -> (i32, i32) {
    %c0_i32 = arith.constant 0 : i32
    %c0_i32_0 = arith.constant 0 : i32
    %c0_i32_1 = arith.constant 0 : i32
    return %c0_i32, %c0_i32_0 : i32, i32
  }
  func.func @transform_11(%arg0: i32) -> (i32, i32) {
    %c0_i32 = arith.constant 0 : i32
    %c0_i32_0 = arith.constant 0 : i32
    %c0_i32_1 = arith.constant 0 : i32
    return %c0_i32, %c0_i32_0 : i32, i32
  }
  func.func @transform_12(%arg0: i32) -> (i32, i32) {
    %c0_i32 = arith.constant 0 : i32
    %c0_i32_0 = arith.constant 0 : i32
    %c0_i32_1 = arith.constant 0 : i32
    return %c0_i32, %c0_i32_0 : i32, i32
  }
  func.func @transform_13(%arg0: i32) -> (i32, i32, i32) {
    %c0_i32 = arith.constant 0 : i32
    %c0_i32_0 = arith.constant 0 : i32
    %c0_i32_1 = arith.constant 0 : i32
    %c0_i32_2 = arith.constant 0 : i32
    return %c0_i32, %c0_i32_0, %c0_i32_1 : i32, i32, i32
  }
  func.func @transform_14(%arg0: i32) -> (i32, i32, i32) {
    %c0_i32 = arith.constant 0 : i32
    %c0_i32_0 = arith.constant 0 : i32
    %c0_i32_1 = arith.constant 0 : i32
    %c0_i32_2 = arith.constant 0 : i32
    return %c0_i32, %c0_i32_0, %c0_i32_1 : i32, i32, i32
  }
  func.func @transform_15(%arg0: i32) -> (i32, i32) {
    %c0_i32 = arith.constant 0 : i32
    %c0_i32_0 = arith.constant 0 : i32
    %c0_i32_1 = arith.constant 0 : i32
    return %c0_i32, %c0_i32_0 : i32, i32
  }
  func.func @transform_16(%arg0: i32) -> (i32, i32) {
    %c0_i32 = arith.constant 0 : i32
    %c0_i32_0 = arith.constant 0 : i32
    %c0_i32_1 = arith.constant 0 : i32
    return %c0_i32, %c0_i32_0 : i32, i32
  }
  func.func @transform_17(%arg0: i32) -> (i32, i32) {
    %c0_i32 = arith.constant 0 : i32
    %c0_i32_0 = arith.constant 0 : i32
    return %arg0, %c0_i32 : i32, i32
  }
}

</mosaic_0001>

<bundles_post_ra>
// kernel: mlp_scorenet_forward.1
= control target key start
LH: loop header
LB: loop body
LE: loop exit
PB: predicated region body
PF: predicated region fallthrough
CT: control target
= control target key end

     0   :  { %s4543_s0 = inlined_call_operand.hbm [shape: bf16[16,256], index: 0, kind: input, shape index: {}]   ;;  %s4544_s1 = inlined_call_operand.hbm [shape: bf16[16,256], index: 1, kind: input, shape index: {}]   ;;  %s4545_s2 = inlined_call_operand.hbm [shape: f32[16,1], index: 2, kind: input, shape index: {}]   ;;  %s4546_s3 = inlined_call_operand.hbm [shape: bf16[256,256], index: 3, kind: input, shape index: {}]   ;;  %s4547_s4 = inlined_call_operand.hbm [shape: f32[1,256], index: 4, kind: input, shape index: {}]   ;;  %s4548_s5 = inlined_call_operand.hbm [shape: bf16[256,128], index: 5, kind: input, shape index: {}]   ;;  %s4549_s6 = inlined_call_operand.hbm [shape: f32[1,128], index: 6, kind: input, shape index: {}]   ;;  %s4550_s7 = inlined_call_operand.hbm [shape: bf16[2,128,128], index: 7, kind: input, shape index: {}]   ;;  %s4551_s8 = inlined_call_operand.hbm [shape: f32[2,1,128], index: 8, kind: input, shape index: {}]   ;;  %s4552_s9 = inlined_call_operand.hbm [shape: bf16[128,256], index: 9, kind: input, shape index: {}]   ;;  %s4553_s10 = inlined_call_operand.hbm [shape: f32[1,256], index: 10, kind: input, shape index: {}]   ;;  %s4554_s11 = inlined_call_operand.hbm [shape: bf16[256,640], index: 11, kind: input, shape index: {}]   ;;  %s4555_s12 = inlined_call_operand.hbm [shape: f32[1,640], index: 12, kind: input, shape index: {}]   ;;  %s4556_s13 = inlined_call_operand.hbm [shape: f32[3,1,128], index: 13, kind: input, shape index: {}]   ;;  %s4557_s14 = inlined_call_operand.hbm [shape: f32[3,1,128], index: 14, kind: input, shape index: {}]   ;;  %s4558_s15 = inlined_call_operand.hbm [shape: f32[128,32], index: 15, kind: input, shape index: {}]   ;;  %s4559_s16 = inlined_call_operand.hbm [shape: f32[32,128], index: 16, kind: input, shape index: {}]   ;;  %s4560_s17 = inlined_call_operand.hbm [shape: f32[16,256], index: 17, kind: output, shape index: {}]  }
   0x1   :  { %4567 = sst [smem:[#allocation40_spill]] %s4543_s0 }
   0x2   :  { %4568 = sst [smem:[#allocation41_spill]] %s4544_s1 }
   0x3   :  { %22 = vsyncpa [#allocation3], 0 }
   0x4   :  { %23 = vsyncpa [#allocation6], 0 }
   0x5   :  { %24 = vsyncpa [#allocation9], 0 }
   0x6   :  { %25 = vsyncpa [#allocation12], 0 }
   0x7   :  { %26 = vsyncpa [#allocation15], 0 }
   0x8   :  { %27 = vsyncpa [#allocation18], 0 }
   0x9   :  { %28 = vsyncpa [#allocation21], 0 }
   0xa   :  { %29 = vsyncpa [#allocation24], 0 }
   0xb   :  { %30 = vsyncpa [#allocation27], 0 }
   0xc   :  { %31 = vsyncpa [#allocation4], 0  ;;  %s3951_s24 = smov [#allocation5]   ;;  %s3952_s26 = smov [#allocation8]  }
   0xd   :  { %s49_s25 = sshll.u32 %s3951_s24, 4  ;;  %s73_s27 = sshll.u32 %s3952_s26, 4  ;;  %s50_s25 = int_to_ptr.vmem [resolvable:$true] %s49_s25  ;;  %s4071_s27 = int_to_ptr.vmem [resolvable:$true] %s73_s27 }
   0xe   :  { %s4569_s0 = sld [smem:[#allocation41_spill]] }
  0x14   :  { %s3535_s30 = scalar_lea.hbm %s4569_s0, 256 }
  0x15   :  { %p3536_p0 = scmp.ne.s32.totalorder %s4569_s0, %s3535_s30  ;;  %p3539_p1 = scmp.lt.u32.totalorder %s3535_s30, %s4569_s0 }
  0x17   :  { %p3541_p2 = pnand %p3539_p1, %p3536_p0 }
  0x19   :  { %3544 = shalt.err (!%p3541_p2)
}
  0x1a   :  { %s3545_s21 = scalar_lea.vmem %s50_s25, 256  ;;  %p3550_p4 = scmp.lt.s32.totalorder %s50_s25, %s50_s25 }
  0x1b   :  { %p3546_p3 = scmp.ne.s32.totalorder %s50_s25, %s3545_s21  ;;  %p3551_p5 = scmp.lt.s32.totalorder %s3545_s21, %s3545_s21 }
  0x1d   :  { %p3552_p6 = por %p3551_p5, %p3550_p4 }
  0x1f   :  { %p3553_p7 = pnand %p3552_p6, %p3546_p3 }
  0x21   :  { %3556 = shalt.err (!%p3553_p7)
}
  0x22   :  { %s4563_s22 = smov 128   ;;  %s4565_s23 = smov 8  }
  0x23   :  { %55 = dma.hbm_to_vmem [thread:$0]  %s4569_s0, 256, %s50_s25, [#allocation6], %s4563_s22, %s4563_s22, %s4565_s23  }
  0x24   :  { %s3557_s30 = scalar_lea.hbm %s4546_s3, 4096 }
  0x25   :  { %p3558_p8 = scmp.ne.s32.totalorder %s4546_s3, %s3557_s30  ;;  %p3561_p9 = scmp.lt.u32.totalorder %s3557_s30, %s4546_s3 }
  0x27   :  { %p3563_p10 = pnand %p3561_p9, %p3558_p8 }
  0x29   :  { %3566 = shalt.err (!%p3563_p10)
}
  0x2a   :  { %s3567_s21 = scalar_lea.vmem %s4071_s27, 4096  ;;  %p3572_p12 = scmp.lt.s32.totalorder %s4071_s27, %s4071_s27 }
  0x2b   :  { %p3568_p11 = scmp.ne.s32.totalorder %s4071_s27, %s3567_s21  ;;  %p3573_p13 = scmp.lt.s32.totalorder %s3567_s21, %s3567_s21 }
  0x2d   :  { %p3574_p0 = por %p3573_p13, %p3572_p12 }
  0x2f   :  { %p3575_p1 = pnand %p3574_p0, %p3568_p11 }
  0x31   :  { %3578 = shalt.err (!%p3575_p1)
}
  0x32   :  { %79 = dma.hbm_to_vmem [thread:$0]  %s4546_s3, 4096, %s4071_s27, [#allocation9], %s4563_s22, %s4563_s22, %s4565_s23  }
  0x33   :  { %s3955_s24 = smov [#allocation11]   ;;  %s3579_s30 = scalar_lea.hbm %s4548_s5, 2048 }
  0x34   :  { %s95_s26 = sshll.u32 %s3955_s24, 4  ;;  %p3580_p2 = scmp.ne.s32.totalorder %s4548_s5, %s3579_s30  ;;  %s96_s26 = int_to_ptr.vmem [resolvable:$true] %s95_s26 }
  0x35   :  { %p3583_p3 = scmp.lt.u32.totalorder %s3579_s30, %s4548_s5 }
  0x37   :  { %p3585_p4 = pnand %p3583_p3, %p3580_p2 }
  0x39   :  { %3588 = shalt.err (!%p3585_p4)
}
  0x3a   :  { %s3589_s21 = scalar_lea.vmem %s96_s26, 2048  ;;  %p3594_p6 = scmp.lt.s32.totalorder %s96_s26, %s96_s26 }
  0x3b   :  { %p3590_p5 = scmp.ne.s32.totalorder %s96_s26, %s3589_s21  ;;  %p3595_p7 = scmp.lt.s32.totalorder %s3589_s21, %s3589_s21 }
  0x3d   :  { %p3596_p8 = por %p3595_p7, %p3594_p6 }
  0x3f   :  { %p3597_p9 = pnand %p3596_p8, %p3590_p5 }
  0x41   :  { %3600 = shalt.err (!%p3597_p9)
}
  0x42   :  { %s3956_s3 = smov 64   ;;  %s3957_s27 = smov 4  }
  0x43   :  { %101 = dma.hbm_to_vmem [thread:$0]  %s4548_s5, 2048, %s96_s26, [#allocation12], %s3956_s3, %s3956_s3, %s3957_s27  }
  0x44   :  { %s3958_s24 = smov [#allocation14]   ;;  %s3959_s29 = smov [#allocation17]  }
  0x45   :  { %s117_s28 = sshll.u32 %s3958_s24, 4  ;;  %s141_s30 = sshll.u32 %s3959_s29, 4  ;;  %s118_s28 = int_to_ptr.vmem [resolvable:$true] %s117_s28  ;;  %s142_s30 = int_to_ptr.vmem [resolvable:$true] %s141_s30 }
  0x46   :  { %s3601_s1 = scalar_lea.hbm %s4550_s7, 2048 }
  0x47   :  { %p3602_p10 = scmp.ne.s32.totalorder %s4550_s7, %s3601_s1  ;;  %p3605_p11 = scmp.lt.u32.totalorder %s3601_s1, %s4550_s7 }
  0x49   :  { %p3607_p12 = pnand %p3605_p11, %p3602_p10 }
  0x4b   :  { %3610 = shalt.err (!%p3607_p12)
}
  0x4c   :  { %s3611_s5 = scalar_lea.vmem %s118_s28, 2048  ;;  %p3616_p0 = scmp.lt.s32.totalorder %s118_s28, %s118_s28 }
  0x4d   :  { %p3612_p13 = scmp.ne.s32.totalorder %s118_s28, %s3611_s5  ;;  %p3617_p1 = scmp.lt.s32.totalorder %s3611_s5, %s3611_s5 }
  0x4f   :  { %p3618_p2 = por %p3617_p1, %p3616_p0 }
  0x51   :  { %p3619_p3 = pnand %p3618_p2, %p3612_p13 }
  0x53   :  { %3622 = shalt.err (!%p3619_p3)
}
  0x54   :  { %123 = dma.hbm_to_vmem [thread:$0]  %s4550_s7, 2048, %s118_s28, [#allocation15], %s3956_s3, %s3956_s3, %s3957_s27  }
  0x55   :  { %s3623_s29 = scalar_lea.hbm %s4552_s9, 2048 }
  0x56   :  { %p3624_p4 = scmp.ne.s32.totalorder %s4552_s9, %s3623_s29  ;;  %p3627_p5 = scmp.lt.u32.totalorder %s3623_s29, %s4552_s9 }
  0x58   :  { %p3629_p6 = pnand %p3627_p5, %p3624_p4 }
  0x5a   :  { %3632 = shalt.err (!%p3629_p6)
}
  0x5b   :  { %s3633_s1 = scalar_lea.vmem %s142_s30, 2048  ;;  %p3638_p8 = scmp.lt.s32.totalorder %s142_s30, %s142_s30 }
  0x5c   :  { %p3634_p7 = scmp.ne.s32.totalorder %s142_s30, %s3633_s1  ;;  %p3639_p9 = scmp.lt.s32.totalorder %s3633_s1, %s3633_s1 }
  0x5e   :  { %p3640_p10 = por %p3639_p9, %p3638_p8 }
  0x60   :  { %p3641_p11 = pnand %p3640_p10, %p3634_p7 }
  0x62   :  { %3644 = shalt.err (!%p3641_p11)
}
  0x63   :  { %s4570_s7 = smov 8   ;;  %s4571_s3 = smov 128  }
  0x64   :  { %147 = dma.hbm_to_vmem [thread:$0]  %s4552_s9, 2048, %s142_s30, [#allocation18], %s4571_s3, %s4571_s3, %s4570_s7  }
  0x65   :  { %s3960_s20 = smov [#allocation20]   ;;  %s3645_s25 = scalar_lea.hbm %s4554_s11, 10240 }
  0x66   :  { %s163_s21 = sshll.u32 %s3960_s20, 4  ;;  %p3646_p12 = scmp.ne.s32.totalorder %s4554_s11, %s3645_s25  ;;  %s164_s21 = int_to_ptr.vmem [resolvable:$true] %s163_s21 }
  0x67   :  { %p3649_p13 = scmp.lt.u32.totalorder %s3645_s25, %s4554_s11 }
  0x69   :  { %p3651_p0 = pnand %p3649_p13, %p3646_p12 }
  0x6b   :  { %3654 = shalt.err (!%p3651_p0)
}
  0x6c   :  { %s3655_s23 = scalar_lea.vmem %s164_s21, 10240  ;;  %p3660_p2 = scmp.lt.s32.totalorder %s164_s21, %s164_s21 }
  0x6d   :  { %p3656_p1 = scmp.ne.s32.totalorder %s164_s21, %s3655_s23  ;;  %p3661_p3 = scmp.lt.s32.totalorder %s3655_s23, %s3655_s23 }
  0x6f   :  { %p3662_p4 = por %p3661_p3, %p3660_p2 }
  0x71   :  { %p3663_p5 = pnand %p3662_p4, %p3656_p1 }
  0x73   :  { %3666 = shalt.err (!%p3663_p5)
}
  0x74   :  { %s3961_s9 = smov 320   ;;  %s3962_s30 = smov 20  }
  0x75   :  { %169 = dma.hbm_to_vmem [thread:$0]  %s4554_s11, 10240, %s164_s21, [#allocation21], %s3961_s9, %s3961_s9, %s3962_s30  }
  0x76   :  { %s3963_s1 = smov [#allocation23]   ;;  %s3964_s28 = smov [#allocation26]  }
  0x77   :  { %s185_s27 = sshll.u32 %s3963_s1, 4  ;;  %s209_s20 = sshll.u32 %s3964_s28, 4  ;;  %s186_s27 = int_to_ptr.vmem [resolvable:$true] %s185_s27  ;;  %s4159_s20 = int_to_ptr.vmem [resolvable:$true] %s209_s20 }
  0x78   :  { %s3667_s25 = scalar_lea.hbm %s4556_s13, 48 }
  0x79   :  { %p3668_p6 = scmp.ne.s32.totalorder %s4556_s13, %s3667_s25  ;;  %p3671_p7 = scmp.lt.u32.totalorder %s3667_s25, %s4556_s13 }
  0x7b   :  { %p3673_p8 = pnand %p3671_p7, %p3668_p6 }
  0x7d   :  { %3676 = shalt.err (!%p3673_p8)
}
  0x7e   :  { %s3677_s11 = scalar_lea.vmem %s186_s27, 48  ;;  %s3681_s21 = scalar_lea.vmem %s186_s27, 64 }
  0x7f   :  { %p3678_p9 = scmp.ne.s32.totalorder %s186_s27, %s3677_s11  ;;  %p3682_p10 = scmp.lt.s32.totalorder %s186_s27, %s186_s27 }
  0x80   :  { %p3683_p11 = scmp.lt.s32.totalorder %s3681_s21, %s3677_s11 }
  0x82   :  { %p3684_p12 = por %p3683_p11, %p3682_p10 }
  0x84   :  { %p3685_p13 = pnand %p3684_p12, %p3678_p9 }
  0x86   :  { %3688 = shalt.err (!%p3685_p13)
}
  0x87   :  { %s3965_s23 = smov 16   ;;  %s3966_s9 = smov 1  }
  0x88   :  { %191 = dma.hbm_to_vmem [thread:$0]  %s4556_s13, 48, %s186_s27, [#allocation24], %s3965_s23, %s3965_s23, %s3966_s9  }
  0x89   :  { %s3689_s28 = scalar_lea.hbm %s4558_s15, 2048 }
  0x8a   :  { %p3690_p0 = scmp.ne.s32.totalorder %s4558_s15, %s3689_s28  ;;  %p3693_p1 = scmp.lt.u32.totalorder %s3689_s28, %s4558_s15 }
  0x8c   :  { %p3695_p2 = pnand %p3693_p1, %p3690_p0 }
  0x8e   :  { %3698 = shalt.err (!%p3695_p2)
}
  0x8f   :  { %s3699_s24 = scalar_lea.vmem %s4159_s20, 2048  ;;  %p3704_p4 = scmp.lt.s32.totalorder %s4159_s20, %s4159_s20 }
  0x90   :  { %p3700_p3 = scmp.ne.s32.totalorder %s4159_s20, %s3699_s24  ;;  %p3705_p5 = scmp.lt.s32.totalorder %s3699_s24, %s3699_s24 }
  0x92   :  { %p3706_p6 = por %p3705_p5, %p3704_p4 }
  0x94   :  { %p3707_p7 = pnand %p3706_p6, %p3700_p3 }
  0x96   :  { %3710 = shalt.err (!%p3707_p7)
}
  0x97   :  { %215 = dma.hbm_to_vmem [thread:$0]  %s4558_s15, 2048, %s4159_s20, [#allocation27], %s4571_s3, %s4571_s3, %s4570_s7  }
  0x98   :  { %s3967_s29 = smov [#allocation2]   ;;  %s3968_s11 = smov [#allocation7]  }
  0x99   :  { %s37_s22 = sshll.u32 %s3967_s29, 4  ;;  %s61_s21 = sshll.u32 %s3968_s11, 4  ;;  %s38_s22 = int_to_ptr.vmem [resolvable:$true] %s37_s22  ;;  %s4196_s21 = int_to_ptr.vmem [resolvable:$true] %s61_s21 }
  0x9a   :  { %s4572_s19 = sld [smem:[#allocation40_spill]] }
  0xa0   :  { %s3711_s1 = scalar_lea.hbm %s4572_s19, 256 }
  0xa1   :  { %p3712_p8 = scmp.ne.s32.totalorder %s4572_s19, %s3711_s1  ;;  %p3715_p9 = scmp.lt.u32.totalorder %s3711_s1, %s4572_s19 }
  0xa3   :  { %p3717_p10 = pnand %p3715_p9, %p3712_p8 }
  0xa5   :  { %3720 = shalt.err (!%p3717_p10)
}
  0xa6   :  { %s3721_s15 = scalar_lea.vmem %s38_s22, 256  ;;  %p3726_p12 = scmp.lt.s32.totalorder %s38_s22, %s38_s22 }
  0xa7   :  { %p3722_p11 = scmp.ne.s32.totalorder %s38_s22, %s3721_s15  ;;  %p3727_p13 = scmp.lt.s32.totalorder %s3721_s15, %s3721_s15 }
  0xa9   :  { %p3728_p0 = por %p3727_p13, %p3726_p12 }
  0xab   :  { %p3729_p1 = pnand %p3728_p0, %p3722_p11 }
  0xad   :  { %3732 = shalt.err (!%p3729_p1)
}
  0xae   :  { %43 = dma.hbm_to_vmem [thread:$0]  %s4572_s19, 256, %s38_s22, [#allocation3], %s4571_s3, %s4571_s3, %s4570_s7  }
  0xaf   :  { %s3733_s27 = scalar_lea.hbm %s4545_s2, 256 }
  0xb0   :  { %p3734_p2 = scmp.ne.s32.totalorder %s4545_s2, %s3733_s27  ;;  %p3737_p3 = scmp.lt.u32.totalorder %s3733_s27, %s4545_s2 }
  0xb2   :  { %p3739_p4 = pnand %p3737_p3, %p3734_p2 }
  0xb4   :  { %3742 = shalt.err (!%p3739_p4)
}
  0xb5   :  { %s3743_s1 = scalar_lea.vmem %s4196_s21, 256  ;;  %p3748_p6 = scmp.lt.s32.totalorder %s4196_s21, %s4196_s21 }
  0xb6   :  { %p3744_p5 = scmp.ne.s32.totalorder %s4196_s21, %s3743_s1  ;;  %p3749_p7 = scmp.lt.s32.totalorder %s3743_s1, %s3743_s1 }
  0xb8   :  { %p3750_p8 = por %p3749_p7, %p3748_p6 }
  0xba   :  { %p3751_p9 = pnand %p3750_p8, %p3744_p5 }
  0xbc   :  { %3754 = shalt.err (!%p3751_p9)
}
  0xbd   :  { %67 = dma.hbm_to_vmem [thread:$0]  %s4545_s2, 256, %s4196_s21, [#allocation6], %s4571_s3, %s4571_s3, %s4570_s7  }
  0xbe   :  { %s3969_s28 = smov [#allocation10]   ;;  %s3970_s26 = smov [#allocation13]  }
  0xbf   :  { %s86_s5 = sshll.u32 %s3969_s28, 4  ;;  %s108_s25 = sshll.u32 %s3970_s26, 4  ;;  %s87_s5 = int_to_ptr.vmem [resolvable:$true] %s86_s5  ;;  %s109_s25 = int_to_ptr.vmem [resolvable:$true] %s108_s25 }
  0xc0   :  { %s3755_s0 = scalar_lea.hbm %s4547_s4, 32 }
  0xc1   :  { %p3756_p10 = scmp.ne.s32.totalorder %s4547_s4, %s3755_s0  ;;  %p3759_p11 = scmp.lt.u32.totalorder %s3755_s0, %s4547_s4 }
  0xc3   :  { %p3761_p12 = pnand %p3759_p11, %p3756_p10 }
  0xc5   :  { %3764 = shalt.err (!%p3761_p12)
}
  0xc6   :  { %s3765_s2 = scalar_lea.vmem %s87_s5, 32  ;;  %p3770_p0 = scmp.lt.s32.totalorder %s87_s5, %s87_s5 }
  0xc7   :  { %p3766_p13 = scmp.ne.s32.totalorder %s87_s5, %s3765_s2  ;;  %p3771_p1 = scmp.lt.s32.totalorder %s3765_s2, %s3765_s2 }
  0xc9   :  { %p3772_p2 = por %p3771_p1, %p3770_p0 }
  0xcb   :  { %p3773_p3 = pnand %p3772_p2, %p3766_p13 }
  0xcd   :  { %3776 = shalt.err (!%p3773_p3)
}
  0xce   :  { %89 = dma.hbm_to_vmem [thread:$0]  %s4547_s4, 32, %s87_s5, [#allocation9]  }
  0xcf   :  { %s3777_s1 = scalar_lea.hbm %s4549_s6, 16 }
  0xd0   :  { %p3778_p4 = scmp.ne.s32.totalorder %s4549_s6, %s3777_s1  ;;  %p3781_p5 = scmp.lt.u32.totalorder %s3777_s1, %s4549_s6 }
  0xd2   :  { %p3783_p6 = pnand %p3781_p5, %p3778_p4 }
  0xd4   :  { %3786 = shalt.err (!%p3783_p6)
}
  0xd5   :  { %s3787_s15 = scalar_lea.vmem %s109_s25, 16  ;;  %s3791_s20 = scalar_lea.vmem %s109_s25, 32 }
  0xd6   :  { %p3788_p7 = scmp.ne.s32.totalorder %s109_s25, %s3787_s15  ;;  %p3792_p8 = scmp.lt.s32.totalorder %s109_s25, %s109_s25 }
  0xd7   :  { %p3793_p9 = scmp.lt.s32.totalorder %s3791_s20, %s3787_s15 }
  0xd9   :  { %p3794_p10 = por %p3793_p9, %p3792_p8 }
  0xdb   :  { %p3795_p11 = pnand %p3794_p10, %p3788_p7 }
  0xdd   :  { %3798 = shalt.err (!%p3795_p11)
}
  0xde   :  { %111 = dma.hbm_to_vmem [thread:$0]  %s4549_s6, 16, %s109_s25, [#allocation12]  }
  0xdf   :  { %s3971_s0 = smov [#allocation16]   ;;  %s3972_s13 = smov [#allocation19]  }
  0xe0   :  { %s129_s24 = sshll.u32 %s3971_s0, 4  ;;  %s154_s27 = sshll.u32 %s3972_s13, 4  ;;  %s130_s24 = int_to_ptr.vmem [resolvable:$true] %s129_s24  ;;  %s155_s27 = int_to_ptr.vmem [resolvable:$true] %s154_s27 }
  0xe1   :  { %s3799_s21 = scalar_lea.hbm %s4551_s8, 32 }
  0xe2   :  { %p3800_p12 = scmp.ne.s32.totalorder %s4551_s8, %s3799_s21  ;;  %p3803_p13 = scmp.lt.u32.totalorder %s3799_s21, %s4551_s8 }
  0xe4   :  { %p3805_p0 = pnand %p3803_p13, %p3800_p12 }
  0xe6   :  { %3808 = shalt.err (!%p3805_p0)
}
  0xe7   :  { %s3809_s6 = scalar_lea.vmem %s130_s24, 32  ;;  %p3814_p2 = scmp.lt.s32.totalorder %s130_s24, %s130_s24 }
  0xe8   :  { %p3810_p1 = scmp.ne.s32.totalorder %s130_s24, %s3809_s6  ;;  %p3815_p3 = scmp.lt.s32.totalorder %s3809_s6, %s3809_s6 }
  0xea   :  { %p3816_p4 = por %p3815_p3, %p3814_p2 }
  0xec   :  { %p3817_p5 = pnand %p3816_p4, %p3810_p1 }
  0xee   :  { %3820 = shalt.err (!%p3817_p5)
}
  0xef   :  { %135 = dma.hbm_to_vmem [thread:$0]  %s4551_s8, 32, %s130_s24, [#allocation15], %s3965_s23, %s3965_s23, %s3966_s9  }
  0xf0   :  { %s3821_s26 = scalar_lea.hbm %s4553_s10, 32 }
  0xf1   :  { %p3822_p6 = scmp.ne.s32.totalorder %s4553_s10, %s3821_s26  ;;  %p3825_p7 = scmp.lt.u32.totalorder %s3821_s26, %s4553_s10 }
  0xf3   :  { %p3827_p8 = pnand %p3825_p7, %p3822_p6 }
  0xf5   :  { %3830 = shalt.err (!%p3827_p8)
}
  0xf6   :  { %s3831_s0 = scalar_lea.vmem %s155_s27, 32  ;;  %p3836_p10 = scmp.lt.s32.totalorder %s155_s27, %s155_s27 }
  0xf7   :  { %p3832_p9 = scmp.ne.s32.totalorder %s155_s27, %s3831_s0  ;;  %p3837_p11 = scmp.lt.s32.totalorder %s3831_s0, %s3831_s0 }
  0xf9   :  { %p3838_p12 = por %p3837_p11, %p3836_p10 }
  0xfb   :  { %p3839_p13 = pnand %p3838_p12, %p3832_p9 }
  0xfd   :  { %3842 = shalt.err (!%p3839_p13)
}
  0xfe   :  { %157 = dma.hbm_to_vmem [thread:$0]  %s4553_s10, 32, %s155_s27, [#allocation18]  }
  0xff   :  { %s3973_s13 = smov [#allocation22]   ;;  %s3974_s2 = smov [#allocation25]  }
 0x100   :  { %s176_s29 = sshll.u32 %s3973_s13, 4  ;;  %s197_s21 = sshll.u32 %s3974_s2, 4  ;;  %s177_s29 = int_to_ptr.vmem [resolvable:$true] %s176_s29  ;;  %s4284_s21 = int_to_ptr.vmem [resolvable:$true] %s197_s21 }
 0x101   :  { %s3843_s18 = scalar_lea.hbm %s4555_s12, 80 }
 0x102   :  { %p3844_p0 = scmp.ne.s32.totalorder %s4555_s12, %s3843_s18  ;;  %p3847_p1 = scmp.lt.u32.totalorder %s3843_s18, %s4555_s12 }
 0x104   :  { %p3849_p2 = pnand %p3847_p1, %p3844_p0 }
 0x106   :  { %3852 = shalt.err (!%p3849_p2)
}
 0x107   :  { %s3853_s10 = scalar_lea.vmem %s177_s29, 80  ;;  %s3857_s27 = scalar_lea.vmem %s177_s29, 96 }
 0x108   :  { %p3854_p3 = scmp.ne.s32.totalorder %s177_s29, %s3853_s10  ;;  %p3858_p4 = scmp.lt.s32.totalorder %s177_s29, %s177_s29 }
 0x109   :  { %p3859_p5 = scmp.lt.s32.totalorder %s3857_s27, %s3853_s10 }
 0x10b   :  { %p3860_p6 = por %p3859_p5, %p3858_p4 }
 0x10d   :  { %p3861_p7 = pnand %p3860_p6, %p3854_p3 }
 0x10f   :  { %3864 = shalt.err (!%p3861_p7)
}
 0x110   :  { %179 = dma.hbm_to_vmem [thread:$0]  %s4555_s12, 80, %s177_s29, [#allocation21]  }
 0x111   :  { %s3865_s20 = scalar_lea.hbm %s4557_s14, 48 }
 0x112   :  { %p3866_p8 = scmp.ne.s32.totalorder %s4557_s14, %s3865_s20  ;;  %p3869_p9 = scmp.lt.u32.totalorder %s3865_s20, %s4557_s14 }
 0x114   :  { %p3871_p10 = pnand %p3869_p9, %p3866_p8 }
 0x116   :  { %3874 = shalt.err (!%p3871_p10)
}
 0x117   :  { %s3875_s24 = scalar_lea.vmem %s4284_s21, 48  ;;  %s3879_s12 = scalar_lea.vmem %s4284_s21, 64 }
 0x118   :  { %p3876_p11 = scmp.ne.s32.totalorder %s4284_s21, %s3875_s24  ;;  %p3880_p12 = scmp.lt.s32.totalorder %s4284_s21, %s4284_s21 }
 0x119   :  { %p3881_p13 = scmp.lt.s32.totalorder %s3879_s12, %s3875_s24 }
 0x11b   :  { %p3882_p0 = por %p3881_p13, %p3880_p12 }
 0x11d   :  { %p3883_p1 = pnand %p3882_p0, %p3876_p11 }
 0x11f   :  { %3886 = shalt.err (!%p3883_p1)
}
 0x120   :  { %203 = dma.hbm_to_vmem [thread:$0]  %s4557_s14, 48, %s4284_s21, [#allocation24], %s3965_s23, %s3965_s23, %s3966_s9  }
 0x121   :  { %s3975_s2 = smov [#allocation28]   ;;  %s3887_s1 = scalar_lea.hbm %s4559_s16, 512 }
 0x122   :  { %s221_s11 = sshll.u32 %s3975_s2, 4  ;;  %p3888_p2 = scmp.ne.s32.totalorder %s4559_s16, %s3887_s1  ;;  %s222_s11 = int_to_ptr.vmem [resolvable:$true] %s221_s11 }
 0x123   :  { %p3891_p3 = scmp.lt.u32.totalorder %s3887_s1, %s4559_s16 }
 0x125   :  { %p3893_p4 = pnand %p3891_p3, %p3888_p2 }
 0x127   :  { %3896 = shalt.err (!%p3893_p4)
}
 0x128   :  { %s3897_s27 = scalar_lea.vmem %s222_s11, 512  ;;  %p3902_p6 = scmp.lt.s32.totalorder %s222_s11, %s222_s11 }
 0x129   :  { %p3898_p5 = scmp.ne.s32.totalorder %s222_s11, %s3897_s27  ;;  %p3903_p7 = scmp.lt.s32.totalorder %s3897_s27, %s3897_s27 }
 0x12b   :  { %p3904_p8 = por %p3903_p7, %p3902_p6 }
 0x12d   :  { %p3905_p9 = pnand %p3904_p8, %p3898_p5 }
 0x12f   :  { %3908 = shalt.err (!%p3905_p9)
}
 0x130   :  { %227 = dma.hbm_to_vmem [thread:$0]  %s4559_s16, 512, %s222_s11, [#allocation27], %s4571_s3, %s4571_s3, %s4570_s7  }
 0x131   :  { %3931 = dma.done.wait [#allocation3], 256  }
 0x132   :  { %3932 = vsyncadd [#allocation3], 4294967040 }
 0x133   :  { %3933 = dma.done.wait [#allocation6], 512  }
 0x134   :  { %3934 = vsyncadd [#allocation6], 4294966784 }
 0x135   :  { %3935 = dma.done.wait [#allocation9], 4128  }
 0x136   :  { %3936 = vsyncadd [#allocation9], 4294963168 }
 0x137   :  { %3937 = dma.done.wait [#allocation12], 2064  }
 0x138   :  { %3938 = vsyncadd [#allocation12], 4294965232 }
 0x139   :  { %3939 = dma.done.wait [#allocation15], 2080  }
 0x13a   :  { %3940 = vsyncadd [#allocation15], 4294965216 }
 0x13b   :  { %3941 = dma.done.wait [#allocation18], 2080  }
 0x13c   :  { %3942 = vsyncadd [#allocation18], 4294965216 }
 0x13d   :  { %3943 = dma.done.wait [#allocation21], 10320  }
 0x13e   :  { %3944 = vsyncadd [#allocation21], 4294956976 }
 0x13f   :  { %3945 = dma.done.wait [#allocation24], 96  }
 0x140   :  { %3946 = vsyncadd [#allocation24], 4294967200 }
 0x141   :  { %3947 = dma.done.wait [#allocation27], 2560  }
 0x142   :  { %3948 = vsyncadd [#allocation27], 4294964736  ;;  %v3261_v0 = vld [vmem:[#allocation8 + $0x4] ss:$8 sps:$4 sm:$0xff]   ;;  %v3263_v1 = vld [vmem:[#allocation8] ss:$8 sps:$4 sm:$0xff]  }
 0x143   :  { %496 = vmatprep.subr.bf16.mxu0 %v3261_v0  ;;  %v3264_v2 = vld [vmem:[#allocation8 + $0x14] ss:$8 sps:$4 sm:$0xff]   ;;  %v3266_v3 = vld [vmem:[#allocation8 + $0x10] ss:$8 sps:$4 sm:$0xff]   ;;  %v3267_v4 = vld [vmem:[#allocation8 + $0x24] ss:$8 sps:$4 sm:$0xff]  }
 0x144   :  { %497 = vmatpush1.bf16.msra.mxu0 %v3263_v1  ;;  %v3269_v5 = vld [vmem:[#allocation8 + $0x20] ss:$8 sps:$4 sm:$0xff]   ;;  %v3270_v6 = vld [vmem:[#allocation8 + $0x34] ss:$8 sps:$4 sm:$0xff]   ;;  %v3272_v7 = vld [vmem:[#allocation8 + $0x30] ss:$8 sps:$4 sm:$0xff]  }
 0x145   :  { %498 = vmatprep.subr.bf16.mxu0 %v3264_v2  ;;  %v3273_v8 = vld [vmem:[#allocation8 + $0x44] ss:$8 sps:$4 sm:$0xff]   ;;  %v3275_v9 = vld [vmem:[#allocation8 + $0x40] ss:$8 sps:$4 sm:$0xff]   ;;  %v3276_v10 = vld [vmem:[#allocation8 + $0x54] ss:$8 sps:$4 sm:$0xff]  }
 0x146   :  { %v3278_v11 = vld [vmem:[#allocation8 + $0x50] ss:$8 sps:$4 sm:$0xff]   ;;  %v3279_v12 = vld [vmem:[#allocation8 + $0x64] ss:$8 sps:$4 sm:$0xff]   ;;  %v3281_v13 = vld [vmem:[#allocation8 + $0x60] ss:$8 sps:$4 sm:$0xff]  }
 0x147   :  { %v3311_v14 = vld [vmem:[#allocation5 + $0x4] ss:$8 sps:$4 sm:$0xff]   ;;  %v3314_v16 = vld [vmem:[#allocation20] ss:$20 sps:$4 sm:$0xff]   ;;  %v3284_v20 = vld [vmem:[#allocation8 + $0x70] ss:$8 sps:$4 sm:$0xff]  }
 0x148   :  { %499 = vmatpush1.bf16.msra.mxu0 %v3266_v3  ;;  %v3312_v15 = vld [vmem:[#allocation20 + $0x4] ss:$20 sps:$4 sm:$0xff]   ;;  %v3282_v17 = vld [vmem:[#allocation8 + $0x74] ss:$8 sps:$4 sm:$0xff]   ;;  %528 = vmatprep.mubr.bf16.mxu0 %v3311_v14  ;;  %v3320_v19 = vld [vmem:[#allocation20 + $0x28] ss:$20 sps:$4 sm:$0xff]  }
 0x149   :  { %500 = vmatprep.subr.bf16.mxu0 %v3267_v4  ;;  %1108 = vmatprep.subr.bf16.mxu1 %v3312_v15  ;;  %v3318_v18 = vld [vmem:[#allocation20 + $0x2c] ss:$20 sps:$4 sm:$0xff]   ;;  %v3285_v21 = vld [vmem:[#allocation8 + $0x84] ss:$8 sps:$4 sm:$0xff]   ;;  %v3324_v22 = vld [vmem:[#allocation20 + $0x54] ss:$20 sps:$4 sm:$0xff]  }
 0x14a   :  { %1109 = vmatpush1.bf16.msra.mxu1 %v3314_v16  ;;  %v3326_v23 = vld [vmem:[#allocation20 + $0x50] ss:$20 sps:$4 sm:$0xff]   ;;  %v3287_v24 = vld [vmem:[#allocation8 + $0x80] ss:$8 sps:$4 sm:$0xff]   ;;  %v3288_v26 = vld [vmem:[#allocation8 + $0x94] ss:$8 sps:$4 sm:$0xff]  }
 0x14b   :  { %1110 = vmatprep.subr.bf16.mxu1 %v3318_v18  ;;  %v3330_v25 = vld [vmem:[#allocation20 + $0x7c] ss:$20 sps:$4 sm:$0xff]   ;;  %v3332_v27 = vld [vmem:[#allocation20 + $0x78] ss:$20 sps:$4 sm:$0xff]   ;;  %v3338_v31 = vld [vmem:[#allocation20 + $0xa0] ss:$20 sps:$4 sm:$0xff]  }
 0x14c   :  { %501 = vmatpush1.bf16.msra.mxu0 %v3269_v5  ;;  %v3290_v28 = vld [vmem:[#allocation8 + $0x90] ss:$8 sps:$4 sm:$0xff]   ;;  %v3336_v29 = vld [vmem:[#allocation20 + $0xa4] ss:$20 sps:$4 sm:$0xff]   ;;  %v3342_v33 = vld [vmem:[#allocation20 + $0xcc] ss:$20 sps:$4 sm:$0xff]  }
 0x14d   :  { %502 = vmatprep.subr.bf16.mxu0 %v3270_v6  ;;  %v3291_v30 = vld [vmem:[#allocation8 + $0xa4] ss:$8 sps:$4 sm:$0xff]   ;;  %v3293_v32 = vld [vmem:[#allocation8 + $0xa0] ss:$8 sps:$4 sm:$0xff]   ;;  %v3294_v34 = vld [vmem:[#allocation8 + $0xb4] ss:$8 sps:$4 sm:$0xff]  }
 0x14e   :  { %1111 = vmatpush1.bf16.msra.mxu1 %v3320_v19  ;;  %v3296_v35 = vld [vmem:[#allocation8 + $0xb0] ss:$8 sps:$4 sm:$0xff]   ;;  %v3297_v38 = vld [vmem:[#allocation8 + $0xc4] ss:$8 sps:$4 sm:$0xff]   ;;  %v3299_v40 = vld [vmem:[#allocation8 + $0xc0] ss:$8 sps:$4 sm:$0xff]  }
 0x14f   :  { %1112 = vmatprep.subr.bf16.mxu1 %v3324_v22  ;;  %v3344_v36 = vld [vmem:[#allocation20 + $0xc8] ss:$20 sps:$4 sm:$0xff]   ;;  %v3350_v39 = vld [vmem:[#allocation20 + $0xf0] ss:$20 sps:$4 sm:$0xff]   ;;  %v3300_v41 = vld [vmem:[#allocation8 + $0xd4] ss:$8 sps:$4 sm:$0xff]  }
 0x150   :  { %503 = vmatpush1.bf16.msra.mxu0 %v3272_v7  ;;  %v3348_v37 = vld [vmem:[#allocation20 + $0xf4] ss:$20 sps:$4 sm:$0xff]   ;;  %v3303_v43 = vld [vmem:[#allocation8 + $0xe4] ss:$8 sps:$4 sm:$0xff]   ;;  %v3305_v44 = vld [vmem:[#allocation8 + $0xe0] ss:$8 sps:$4 sm:$0xff]  }
 0x151   :  { %504 = vmatprep.subr.bf16.mxu0 %v3273_v8  ;;  %v3302_v42 = vld [vmem:[#allocation8 + $0xd0] ss:$8 sps:$4 sm:$0xff]   ;;  %v3306_v45 = vld [vmem:[#allocation8 + $0xf4] ss:$8 sps:$4 sm:$0xff]   ;;  %v3309_v48 = vld [vmem:[#allocation5] ss:$8 sps:$4 sm:$0xff]  }
 0x152   :  { %1113 = vmatpush1.bf16.msra.mxu1 %v3326_v23  ;;  %v3308_v46 = vld [vmem:[#allocation8 + $0xf0] ss:$8 sps:$4 sm:$0xff]   ;;  %v3317_v47 = vld [vmem:[#allocation20 + $0xc] ss:$20 sps:$4 sm:$0xff]   ;;  %v3335_v54 = vld [vmem:[#allocation20 + $0x84] ss:$20 sps:$4 sm:$0xff]  }
 0x153   :  { %1114 = vmatprep.subr.bf16.mxu1 %v3330_v25  ;;  %v3315_v49 = vld [vmem:[#allocation20 + $0x8] ss:$20 sps:$4 sm:$0xff]   ;;  %v3321_v51 = vld [vmem:[#allocation20 + $0x30] ss:$20 sps:$4 sm:$0xff]   ;;  %v3327_v53 = vld [vmem:[#allocation20 + $0x58] ss:$20 sps:$4 sm:$0xff]  }
 0x154   :  { %505 = vmatpush1.bf16.msra.mxu0 %v3275_v9  ;;  %v3323_v50 = vld [vmem:[#allocation20 + $0x34] ss:$20 sps:$4 sm:$0xff]   ;;  %v3329_v52 = vld [vmem:[#allocation20 + $0x5c] ss:$20 sps:$4 sm:$0xff]   ;;  %v3341_v56 = vld [vmem:[#allocation20 + $0xac] ss:$20 sps:$4 sm:$0xff]  }
 0x155   :  { %506 = vmatprep.subr.bf16.mxu0 %v3276_v10  ;;  %v3333_v55 = vld [vmem:[#allocation20 + $0x80] ss:$20 sps:$4 sm:$0xff]   ;;  %v3339_v57 = vld [vmem:[#allocation20 + $0xa8] ss:$20 sps:$4 sm:$0xff]   ;;  %v3345_v59 = vld [vmem:[#allocation20 + $0xd0] ss:$20 sps:$4 sm:$0xff]  }
 0x156   :  { %1115 = vmatpush1.bf16.msra.mxu1 %v3332_v27  ;;  %v3347_v58 = vld [vmem:[#allocation20 + $0xd4] ss:$20 sps:$4 sm:$0xff]   ;;  %v3353_v60 = vld [vmem:[#allocation20 + $0xfc] ss:$20 sps:$4 sm:$0xff]   ;;  %v3351_v61 = vld [vmem:[#allocation20 + $0xf8] ss:$20 sps:$4 sm:$0xff]  }
 0x157   :  { %1116 = vmatprep.subr.bf16.mxu1 %v3336_v29  ;;  %v3354_v62 = vld [vmem:[#allocation20 + $0x11c] ss:$20 sps:$4 sm:$0xff]   ;;  %v3356_v63 = vld [vmem:[#allocation20 + $0x118] ss:$20 sps:$4 sm:$0xff]   ;;  %v3357_v1 = vld [vmem:[#allocation20 + $0x120] ss:$20 sps:$4 sm:$0xff]  }
 0x158   :  { %507 = vmatpush1.bf16.msra.mxu0 %v3278_v11  ;;  %v3359_v0 = vld [vmem:[#allocation20 + $0x124] ss:$20 sps:$4 sm:$0xff]   ;;  %v3362_v3 = vld [vmem:[#allocation20 + $0x140] ss:$20 sps:$4 sm:$0xff]   ;;  %v3363_v5 = vld [vmem:[#allocation20 + $0x148] ss:$20 sps:$4 sm:$0xff]  }
 0x159   :  { %508 = vmatprep.subr.bf16.mxu0 %v3279_v12  ;;  %v3360_v2 = vld [vmem:[#allocation20 + $0x144] ss:$20 sps:$4 sm:$0xff]   ;;  %v3365_v4 = vld [vmem:[#allocation20 + $0x14c] ss:$20 sps:$4 sm:$0xff]   ;;  %v3368_v7 = vld [vmem:[#allocation20 + $0x168] ss:$20 sps:$4 sm:$0xff]  }
 0x15a   :  { %1117 = vmatpush1.bf16.msra.mxu1 %v3338_v31  ;;  %v3366_v6 = vld [vmem:[#allocation20 + $0x16c] ss:$20 sps:$4 sm:$0xff]   ;;  %v3371_v8 = vld [vmem:[#allocation20 + $0x174] ss:$20 sps:$4 sm:$0xff]   ;;  %v3369_v9 = vld [vmem:[#allocation20 + $0x170] ss:$20 sps:$4 sm:$0xff]  }
 0x15b   :  { %1118 = vmatprep.subr.bf16.mxu1 %v3342_v33  ;;  %v3372_v10 = vld [vmem:[#allocation20 + $0x194] ss:$20 sps:$4 sm:$0xff]   ;;  %v3374_v11 = vld [vmem:[#allocation20 + $0x190] ss:$20 sps:$4 sm:$0xff]   ;;  %v3380_v15 = vld [vmem:[#allocation20 + $0x1b8] ss:$20 sps:$4 sm:$0xff]  }
 0x15c   :  { %509 = vmatpush1.bf16.msra.mxu0 %v3281_v13  ;;  %v3377_v12 = vld [vmem:[#allocation20 + $0x19c] ss:$20 sps:$4 sm:$0xff]   ;;  %v3375_v13 = vld [vmem:[#allocation20 + $0x198] ss:$20 sps:$4 sm:$0xff]   ;;  %v3386_v19 = vld [vmem:[#allocation20 + $0x1e0] ss:$20 sps:$4 sm:$0xff]  }
 0x15d   :  { %510 = vmatprep.subr.bf16.mxu0 %v3282_v17  ;;  %v3378_v14 = vld [vmem:[#allocation20 + $0x1bc] ss:$20 sps:$4 sm:$0xff]   ;;  %v3383_v16 = vld [vmem:[#allocation20 + $0x1c4] ss:$20 sps:$4 sm:$0xff]   ;;  %v3381_v17 = vld [vmem:[#allocation20 + $0x1c0] ss:$20 sps:$4 sm:$0xff]  }
 0x15e   :  { %1119 = vmatpush1.bf16.msra.mxu1 %v3344_v36  ;;  %v3384_v18 = vld [vmem:[#allocation20 + $0x1e4] ss:$20 sps:$4 sm:$0xff]   ;;  %v3390_v22 = vld [vmem:[#allocation20 + $0x20c] ss:$20 sps:$4 sm:$0xff]   ;;  %v3392_v23 = vld [vmem:[#allocation20 + $0x208] ss:$20 sps:$4 sm:$0xff]  }
 0x15f   :  { %1120 = vmatprep.subr.bf16.mxu1 %v3348_v37  ;;  %v3393_v25 = vld [vmem:[#allocation20 + $0x210] ss:$20 sps:$4 sm:$0xff]   ;;  %v3399_v29 = vld [vmem:[#allocation20 + $0x238] ss:$20 sps:$4 sm:$0xff]   ;;  %v3405_v33 = vld [vmem:[#allocation20 + $0x260] ss:$20 sps:$4 sm:$0xff]  }
 0x160   :  { %511 = vmatpush1.bf16.msra.mxu0 %v3284_v20  ;;  %v3389_v20 = vld [vmem:[#allocation20 + $0x1ec] ss:$20 sps:$4 sm:$0xff]   ;;  %v3398_v27 = vld [vmem:[#allocation20 + $0x230] ss:$20 sps:$4 sm:$0xff]   ;;  %vm1532_vm0 = vcmask 261120   ;;  %vm3977_vm1 = vmmov 0  }
 0x161   :  { %512 = vmatprep.subr.bf16.mxu0 %v3285_v21  ;;  %v3387_v21 = vld [vmem:[#allocation20 + $0x1e8] ss:$20 sps:$4 sm:$0xff]   ;;  %v3404_v31 = vld [vmem:[#allocation20 + $0x258] ss:$20 sps:$4 sm:$0xff]   ;;  %s3979_s16 = smov [#allocation29]  }
 0x162   :  { %1121 = vmatpush1.bf16.msra.mxu1 %v3350_v39  ;;  %s2553_s7 = sshll.u32 %s3979_s16, 4  ;;  %s2554_s7 = int_to_ptr.vmem [resolvable:$true] %s2553_s7 }
 0x163   :  { %1122 = vmatprep.subr.bf16.mxu1 %v3354_v62  ;;  %s3909_s3 = scalar_lea.vmem %s2554_s7, 512  ;;  %p3914_p11 = scmp.lt.s32.totalorder %s2554_s7, %s2554_s7 }
 0x164   :  { %513 = vmatpush1.bf16.msra.mxu0 %v3287_v24  ;;  %v3395_v24 = vld [vmem:[#allocation20 + $0x214] ss:$20 sps:$4 sm:$0xff]   ;;  %p3910_p10 = scmp.ne.s32.totalorder %s2554_s7, %s3909_s3  ;;  %p3915_p12 = scmp.lt.s32.totalorder %s3909_s3, %s3909_s3 }
 0x165   :  { %514 = vmatprep.subr.bf16.mxu0 %v3288_v26  ;;  %v3396_v26 = vld [vmem:[#allocation20 + $0x234] ss:$20 sps:$4 sm:$0xff]  }
 0x166   :  { %1123 = vmatpush1.bf16.msra.mxu1 %v3356_v63  ;;  %p3916_p13 = por %p3915_p12, %p3914_p11 }
 0x167   :  { %1124 = vmatprep.subr.bf16.mxu1 %v3360_v2 }
 0x168   :  { %515 = vmatpush1.bf16.msra.mxu0 %v3290_v28  ;;  %v3401_v28 = vld [vmem:[#allocation20 + $0x23c] ss:$20 sps:$4 sm:$0xff]   ;;  %p3917_p0 = pnand %p3916_p13, %p3910_p10 }
 0x169   :  { %516 = vmatprep.subr.bf16.mxu0 %v3291_v30  ;;  %v3402_v30 = vld [vmem:[#allocation20 + $0x25c] ss:$20 sps:$4 sm:$0xff]  }
 0x16a   :  { %1125 = vmatpush1.bf16.msra.mxu1 %v3362_v3 }
 0x16b   :  { %1126 = vmatprep.subr.bf16.mxu1 %v3366_v6 }
 0x16c   :  { %517 = vmatpush1.bf16.msra.mxu0 %v3293_v32  ;;  %v3407_v32 = vld [vmem:[#allocation20 + $0x264] ss:$20 sps:$4 sm:$0xff]  }
 0x16d   :  { %518 = vmatprep.subr.bf16.mxu0 %v3294_v34  ;;  %v3408_v34 = vld [vmem:[#allocation20 + $0x150] ss:$20 sps:$4 sm:$0xff]  }
 0x16e   :  { %1127 = vmatpush1.bf16.msra.mxu1 %v3368_v7 }
 0x16f   :  { %1128 = vmatprep.subr.bf16.mxu1 %v3372_v10  ;;  %v3411_v10 = vld [vmem:[#allocation20 + $0x38] ss:$20 sps:$4 sm:$0xff]  }
 0x170   :  { %519 = vmatpush1.bf16.msra.mxu0 %v3296_v35  ;;  %v316_v35 = vlaneseq }
 0x171   :  { %520 = vmatprep.subr.bf16.mxu0 %v3297_v38  ;;  %v314_v38 = vld [vmem:[#allocation10] sm:$0x3] }
 0x172   :  { %1129 = vmatpush1.bf16.msra.mxu1 %v3374_v11  ;;  %v4334_v36 = vshrl.u32 %v316_v35, 7  ;;  %v3412_v11 = vld [vmem:[#allocation20 + $0x1a0] ss:$20 sps:$4 sm:$0xff]  }
 0x173   :  { %1130 = vmatprep.subr.bf16.mxu1 %v3378_v14  ;;  %v3415_v14 = vld [vmem:[#allocation20 + $0x88] ss:$20 sps:$4 sm:$0xff]  }
 0x174   :  { %521 = vmatpush1.bf16.msra.mxu0 %v3299_v40  ;;  %v4337_v37 = vsub.s32 0, %v4334_v36  ;;  %v4340_v39 = vsub.s32 1, %v4334_v36  ;;  %v3435_v35 = vld [vmem:[#allocation11 + $0x28] sm:$0xff]  }
 0x175   :  { %522 = vmatprep.subr.bf16.mxu0 %v3300_v41 }
 0x176   :  { %1131 = vmatpush1.bf16.msra.mxu1 %v3380_v15  ;;  %v319_v40 = vrot.slane %v314_v38, %v4337_v37  ;;  %v323_v41 = vrot.slane %v314_v38, %v4340_v39  ;;  %v3416_v15 = vld [vmem:[#allocation20 + $0x1f0] ss:$20 sps:$4 sm:$0xff]  }
 0x177   :  { %1132 = vmatprep.subr.bf16.mxu1 %v3384_v18  ;;  %v3419_v18 = vld [vmem:[#allocation20 + $0xd8] ss:$20 sps:$4 sm:$0xff]  }
 0x178   :  { %523 = vmatpush1.bf16.msra.mxu0 %v3302_v42  ;;  %v3436_v38 = vld [vmem:[#allocation11 + $0x70] sm:$0xff]  }
 0x179   :  { %524 = vmatprep.subr.bf16.mxu0 %v3303_v43 }
 0x17a   :  { %1133 = vmatpush1.bf16.msra.mxu1 %v3386_v19  ;;  %v3420_v19 = vld [vmem:[#allocation20 + $0x240] ss:$20 sps:$4 sm:$0xff]  }
 0x17b   :  { %1134 = vmatprep.subr.bf16.mxu1 %v3390_v22  ;;  %v3423_v22 = vld [vmem:[#allocation20 + $0x128] ss:$20 sps:$4 sm:$0xff]  }
 0x17c   :  { %525 = vmatpush1.bf16.msra.mxu0 %v3305_v44 }
 0x17d   :  { %526 = vmatprep.subr.bf16.mxu0 %v3306_v45 }
 0x17e   :  { %1135 = vmatpush1.bf16.msra.mxu1 %v3392_v23  ;;  %v3424_v23 = vld [vmem:[#allocation11 + $0x40] sm:$0xff]  }
 0x17f   :  { %1136 = vmatprep.subr.bf16.mxu1 %v3396_v26  ;;  %v3426_v26 = vld [vmem:[#allocation11 + $0x48] sm:$0xff]  }
 0x180   :  { %527 = vmatpush1.bf16.msra.mxu0 %v3308_v46 }
 0x181   :  { %1151 = vmatprep.subr.bf16.mxu0 %v3317_v47 }
 0x182   :  { %1137 = vmatpush1.bf16.msra.mxu1 %v3398_v27  ;;  %v3427_v27 = vld [vmem:[#allocation11 + $0x8] sm:$0xff]  }
 0x183   :  { %529 = vmatmul.mubr.bf16.vlgmr.msra.gmra.mrb[0].mxu0 %v3309_v48  ;;  %1138 = vmatprep.subr.bf16.mxu1 %v3402_v30  ;;  %v3430_v30 = vld [vmem:[#allocation11 + $0x58] sm:$0xff]  }
 0x184   :  { %1152 = vmatpush1.bf16.msra.mxu0 %v3315_v49 }
 0x185   :  { %1153 = vmatprep.subr.bf16.mxu0 %v3323_v50 }
 0x186   :  { %1139 = vmatpush1.bf16.msra.mxu1 %v3404_v31  ;;  %v3431_v31 = vld [vmem:[#allocation11 + $0x18] sm:$0xff]  }
 0x187   :  { %2768 = vmatprep.subr.bf16.mxu1 %v3408_v34  ;;  %v3434_v34 = vld [vmem:[#allocation11 + $0x68] sm:$0xff]  }
 0x188   :  { %1154 = vmatpush1.bf16.msra.mxu0 %v3321_v51 }
 0x189   :  { %1155 = vmatprep.subr.bf16.mxu0 %v3329_v52 }
 0x18c   :  { %1156 = vmatpush1.bf16.msra.mxu0 %v3327_v53 }
 0x18d   :  { %1157 = vmatprep.subr.bf16.mxu0 %v3335_v54 }
 0x190   :  { %1158 = vmatpush1.bf16.msra.mxu0 %v3333_v55 }
 0x191   :  { %1159 = vmatprep.subr.bf16.mxu0 %v3341_v56 }
 0x194   :  { %1160 = vmatpush1.bf16.msra.mxu0 %v3339_v57 }
 0x195   :  { %1161 = vmatprep.subr.bf16.mxu0 %v3347_v58 }
 0x198   :  { %1162 = vmatpush1.bf16.msra.mxu0 %v3345_v59 }
 0x199   :  { %1163 = vmatprep.subr.bf16.mxu0 %v3353_v60 }
 0x19c   :  { %1164 = vmatpush1.bf16.msra.mxu0 %v3351_v61 }
 0x19d   :  { %1165 = vmatprep.subr.bf16.mxu0 %v3359_v0 }
 0x1a0   :  { %1166 = vmatpush1.bf16.msra.mxu0 %v3357_v1 }
 0x1a1   :  { %1167 = vmatprep.subr.bf16.mxu0 %v3365_v4 }
 0x1a4   :  { %1168 = vmatpush1.bf16.msra.mxu0 %v3363_v5 }
 0x1a5   :  { %1169 = vmatprep.subr.bf16.mxu0 %v3371_v8  ;;  %v3409_v8 = vld [vmem:[#allocation20 + $0x10] ss:$20 sps:$4 sm:$0xff]  }
 0x1a8   :  { %1170 = vmatpush1.bf16.msra.mxu0 %v3369_v9  ;;  %v3410_v9 = vld [vmem:[#allocation20 + $0x178] ss:$20 sps:$4 sm:$0xff]  }
 0x1a9   :  { %1171 = vmatprep.subr.bf16.mxu0 %v3377_v12  ;;  %v3413_v12 = vld [vmem:[#allocation20 + $0x60] ss:$20 sps:$4 sm:$0xff]  }
 0x1ac   :  { %1172 = vmatpush1.bf16.msra.mxu0 %v3375_v13  ;;  %v3414_v13 = vld [vmem:[#allocation20 + $0x1c8] ss:$20 sps:$4 sm:$0xff]  }
 0x1ad   :  { %1173 = vmatprep.subr.bf16.mxu0 %v3383_v16  ;;  %v3417_v16 = vld [vmem:[#allocation20 + $0xb0] ss:$20 sps:$4 sm:$0xff]  }
 0x1b0   :  { %1174 = vmatpush1.bf16.msra.mxu0 %v3381_v17  ;;  %v3418_v17 = vld [vmem:[#allocation20 + $0x218] ss:$20 sps:$4 sm:$0xff]  }
 0x1b1   :  { %1175 = vmatprep.subr.bf16.mxu0 %v3389_v20  ;;  %v3421_v20 = vld [vmem:[#allocation20 + $0x100] ss:$20 sps:$4 sm:$0xff]  }
 0x1b4   :  { %1176 = vmatpush1.bf16.msra.mxu0 %v3387_v21  ;;  %v3422_v21 = vld [vmem:[#allocation20 + $0x268] ss:$20 sps:$4 sm:$0xff]  }
 0x1b5   :  { %1177 = vmatprep.subr.bf16.mxu0 %v3395_v24  ;;  %v3425_v24 = vld [vmem:[#allocation11] sm:$0xff]  }
 0x1b8   :  { %1178 = vmatpush1.bf16.msra.mxu0 %v3393_v25  ;;  %v3442_v25 = vld [vmem:[#allocation2 + $0x4] ss:$8 sps:$4 sm:$0xff]  }
 0x1b9   :  { %1179 = vmatprep.subr.bf16.mxu0 %v3401_v28  ;;  %v3428_v28 = vld [vmem:[#allocation11 + $0x50] sm:$0xff]  }
 0x1bc   :  { %1180 = vmatpush1.bf16.msra.mxu0 %v3399_v29  ;;  %v3429_v29 = vld [vmem:[#allocation11 + $0x10] sm:$0xff]  }
 0x1bd   :  { %1181 = vmatprep.subr.bf16.mxu0 %v3407_v32  ;;  %v3432_v32 = vld [vmem:[#allocation11 + $0x60] sm:$0xff]  }
 0x1c0   :  { %1182 = vmatpush1.bf16.msra.mxu0 %v3405_v33  ;;  %v3433_v33 = vld [vmem:[#allocation11 + $0x20] sm:$0xff]  }
 0x256   :  { %v530_v42 = vpop.f32.mrb[0].mxu0 }
 0x257   :  { %v531_v43 = vadd.f32 %v530_v42, %v319_v40  ;;  %v532_v44 = vpop.f32.mrb[1].mxu0  ;;  %v3439_v42 = vld [vmem:[#allocation11 + $0x38] sm:$0xff]  }
 0x258   :  { %v533_v45 = vadd.f32 %v532_v44, %v323_v41  ;;  %v534_v46 = vpop.f32.mrb[2].mxu0  ;;  %v1235_v44 = vld [vmem:[#allocation26] sm:$0xff] }
 0x259   :  { %v2607_v47 = vmul.f32 -1.442695, %v531_v43  ;;  %v535_v48 = vadd.f32 %v534_v46, %v319_v40  ;;  %v536_v49 = vpop.f32.mrb[3].mxu0  ;;  %v3437_v40 = vld [vmem:[#allocation11 + $0x30] sm:$0xff]   ;;  %v1237_v46 = vld [vmem:[#allocation26 + $0x10] sm:$0xff] }
 0x25a   :  { %v2608_v50 = vmul.f32 -1.442695, %v533_v45  ;;  %v537_v51 = vadd.f32 %v536_v49, %v323_v41  ;;  %v3438_v41 = vld [vmem:[#allocation11 + $0x78] sm:$0xff]  }
 0x25b   :  { %3483 = vpow2.f32 %v2607_v47  ;;  %v2609_v52 = vmul.f32 -1.442695, %v535_v48 }
 0x25c   :  { %3485 = vpow2.f32 %v2608_v50  ;;  %v2610_v53 = vmul.f32 -1.442695, %v537_v51  ;;  %v1239_v50 = vld [vmem:[#allocation26 + $0x20] sm:$0xff] }
 0x25d   :  { %3487 = vpow2.f32 %v2609_v52 }
 0x25e   :  { %3489 = vpow2.f32 %v2610_v53  ;;  %v1241_v53 = vld [vmem:[#allocation26 + $0x30] sm:$0xff] }
 0x265   :  { %v3484_v54 = vpop.eup %3483 }
 0x266   :  { %v3486_v55 = vpop.eup %3485  ;;  %v551_v56 = vadd.f32 1.0, %v3484_v54  ;;  %v1242_v54 = vld [vmem:[#allocation26 + $0x38] sm:$0xff] }
 0x267   :  { %v3488_v57 = vpop.eup %3487  ;;  %v552_v58 = vadd.f32 1.0, %v3486_v55  ;;  %v4355_v55 = vpack.c.bf16 %v1242_v54, %v1241_v53  ;;  %v3444_v53 = vld [vmem:[#allocation14 + $0x8] sm:$0xff]   ;;  %v3445_v54 = vld [vmem:[#allocation14 + $0x10] sm:$0xff]  }
 0x268   :  { %v3490_v59 = vpop.eup %3489  ;;  %3491 = vrcp.f32 %v551_v56  ;;  %v553_v60 = vadd.f32 1.0, %v3488_v57  ;;  %v1243_v56 = vld [vmem:[#allocation26 + $0x40] sm:$0xff]  ;;  %v1244_v57 = vld [vmem:[#allocation26 + $0x48] sm:$0xff] }
 0x269   :  { %3493 = vrcp.f32 %v552_v58  ;;  %v554_v61 = vadd.f32 1.0, %v3490_v59  ;;  %v4359_v58 = vpack.c.bf16 %v1244_v57, %v1243_v56  ;;  %v1245_v59 = vld [vmem:[#allocation26 + $0x50] sm:$0xff]  ;;  %v3446_v56 = vld [vmem:[#allocation14 + $0x18] sm:$0xff]  }
 0x26a   :  { %3495 = vrcp.f32 %v553_v60  ;;  %v1246_v60 = vld [vmem:[#allocation26 + $0x58] sm:$0xff]  ;;  %v3447_v57 = vld [vmem:[#allocation14 + $0x20] sm:$0xff]  }
 0x26b   :  { %3497 = vrcp.f32 %v554_v61  ;;  %v4363_v61 = vpack.c.bf16 %v1246_v60, %v1245_v59  ;;  %v3448_v59 = vld [vmem:[#allocation14 + $0x28] sm:$0xff]   ;;  %v3449_v60 = vld [vmem:[#allocation14 + $0x30] sm:$0xff]  }
 0x272   :  { %v3492_v62 = vpop.eup %3491 }
 0x273   :  { %v3494_v63 = vpop.eup %3493  ;;  %v563_v2 = vmul.f32 %v3492_v62, %v531_v43  ;;  %v3440_v43 = vld [vmem:[#allocation2] ss:$8 sps:$4 sm:$0xff]  }
 0x274   :  { %v3496_v0 = vpop.eup %3495  ;;  %v564_v4 = vmul.f32 %v3494_v63, %v533_v45  ;;  %v1236_v45 = vld [vmem:[#allocation26 + $0x8] sm:$0xff]  ;;  %v1247_v62 = vld [vmem:[#allocation26 + $0x60] sm:$0xff] }
 0x275   :  { %v3498_v1 = vpop.eup %3497  ;;  %v565_v3 = vmul.f32 %v3496_v0, %v535_v48  ;;  %v4344_v47 = vpack.c.bf16 %v1236_v45, %v1235_v44  ;;  %v1238_v48 = vld [vmem:[#allocation26 + $0x18] sm:$0xff]  ;;  %v1248_v63 = vld [vmem:[#allocation26 + $0x68] sm:$0xff] }
 0x276   :  { %v566_v5 = vmul.f32 %v3498_v1, %v537_v51  ;;  %v4346_v49 = vpack.c.bf16 %v1238_v48, %v1237_v46  ;;  %v1240_v51 = vld [vmem:[#allocation26 + $0x28] sm:$0xff]  ;;  %v4368_v0 = vpack.c.bf16 %v1248_v63, %v1247_v62  ;;  %v1249_v1 = vld [vmem:[#allocation26 + $0x70] sm:$0xff] }
 0x277   :  { %v663_v6 = vpack.c.bf16 %v565_v3, %v563_v2  ;;  %3111 = vmatprep.subr.bf16.mxu0 %v4344_v47  ;;  %v4351_v52 = vpack.c.bf16 %v1240_v51, %v1239_v50  ;;  %v1250_v2 = vld [vmem:[#allocation26 + $0x78] sm:$0xff]  ;;  %v3443_v50 = vld [vmem:[#allocation14] sm:$0xff]   ;;  %v3976_v51 = vmov 0.0   ;;  %v3450_v62 = vld [vmem:[#allocation14 + $0x38] sm:$0xff]  }
 0x278   :  { %v664_v7 = vpack.c.bf16 %v566_v5, %v564_v4  ;;  %v4372_v3 = vpack.c.bf16 %v1250_v2, %v1249_v1  ;;  %v1251_v4 = vld [vmem:[#allocation28] sm:$0xff]  ;;  %v1252_v5 = vld [vmem:[#allocation28 + $0x8] sm:$0xff] }
 0x27a   :  { %1140 = vmatprep.mubr.bf16.mxu1 %v664_v7  ;;  %1183 = vmatprep.mubr.bf16.mxu0 %v664_v7 }
 0x27b   :  { %1141 = vmatmul.mubr.bf16.vlgmr.msra.gmra.mrb[0].mxu1 %v663_v6  ;;  %1184 = vmatmul.mubr.bf16.vlgmr.msra.gmra.mrb[4].mxu0 %v663_v6 }
 0x27c   :  { %2769 = vmatpush3.bf16.msra.mxu1 %v3409_v8  ;;  %1226 = vmatprep.mubr.bf16.mxu1 %v664_v7 }
 0x27d   :  { %2770 = vmatprep.subr.bf16.mxu1 %v3410_v9  ;;  %3113 = vmatpush3.bf16.msra.mxu0 %v4344_v47 }
 0x27e   :  { %3115 = vmatprep.subr.bf16.mxu0 %v4346_v49 }
 0x280   :  { %2771 = vmatpush3.bf16.msra.mxu1 %v3411_v10 }
 0x281   :  { %2772 = vmatprep.subr.bf16.mxu1 %v3412_v11  ;;  %3117 = vmatpush3.bf16.msra.mxu0 %v4346_v49 }
 0x282   :  { %3119 = vmatprep.subr.bf16.mxu0 %v4351_v52 }
 0x284   :  { %2773 = vmatpush3.bf16.msra.mxu1 %v3413_v12 }
 0x285   :  { %2774 = vmatprep.subr.bf16.mxu1 %v3414_v13  ;;  %3121 = vmatpush3.bf16.msra.mxu0 %v4351_v52 }
 0x286   :  { %3123 = vmatprep.subr.bf16.mxu0 %v4355_v55 }
 0x288   :  { %2775 = vmatpush3.bf16.msra.mxu1 %v3415_v14 }
 0x289   :  { %2776 = vmatprep.subr.bf16.mxu1 %v3416_v15  ;;  %3125 = vmatpush3.bf16.msra.mxu0 %v4355_v55 }
 0x28a   :  { %3127 = vmatprep.subr.bf16.mxu0 %v4359_v58 }
 0x28c   :  { %2777 = vmatpush3.bf16.msra.mxu1 %v3417_v16 }
 0x28d   :  { %2778 = vmatprep.subr.bf16.mxu1 %v3418_v17  ;;  %3129 = vmatpush3.bf16.msra.mxu0 %v4359_v58 }
 0x28e   :  { %3131 = vmatprep.subr.bf16.mxu0 %v4363_v61 }
 0x290   :  { %2779 = vmatpush3.bf16.msra.mxu1 %v3419_v18 }
 0x291   :  { %2780 = vmatprep.subr.bf16.mxu1 %v3420_v19  ;;  %3133 = vmatpush3.bf16.msra.mxu0 %v4363_v61 }
 0x292   :  { %3135 = vmatprep.subr.bf16.mxu0 %v4368_v0 }
 0x294   :  { %2781 = vmatpush3.bf16.msra.mxu1 %v3421_v20 }
 0x295   :  { %2782 = vmatprep.subr.bf16.mxu1 %v3422_v21  ;;  %3137 = vmatpush3.bf16.msra.mxu0 %v4368_v0  ;;  %v4395_v21 = vld [vmem:[#allocation22] sm:$0x1f] }
 0x296   :  { %3139 = vmatprep.subr.bf16.mxu0 %v4372_v3 }
 0x298   :  { %2783 = vmatpush3.bf16.msra.mxu1 %v3423_v22  ;;  %v670_v22 = vrot.slane %v4395_v21, %v4337_v37 }
 0x299   :  { %2790 = vmatprep.subr.bf16.mxu1 %v3424_v23  ;;  %3141 = vmatpush3.bf16.msra.mxu0 %v4372_v3 }
 0x29b   :  { %1227 = vmatmul.mubr.bf16.vlgmr.msra.gmra.mrb[4].mxu1 %v663_v6  ;;  %v4376_v6 = vpack.c.bf16 %v1252_v5, %v1251_v4 }
 0x29c   :  { %2791 = vmatpush3.bf16.msra.mxu1 %v3425_v24  ;;  %1434 = vmatprep.mubr.bf16.mxu1 %v3442_v25  ;;  %v2691_v24 = vld [vmem:[#allocation13] ss:$0 sm:$0xff] }
 0x29d   :  { %2792 = vmatprep.subr.bf16.mxu1 %v3426_v26  ;;  %3143 = vmatprep.subr.bf16.mxu0 %v4376_v6 }
 0x2a0   :  { %2793 = vmatpush3.bf16.msra.mxu1 %v3427_v27 }
 0x2a1   :  { %2794 = vmatprep.subr.bf16.mxu1 %v3428_v28 }
 0x2a4   :  { %2795 = vmatpush3.bf16.msra.mxu1 %v3429_v29 }
 0x2a5   :  { %2796 = vmatprep.subr.bf16.mxu1 %v3430_v30 }
 0x2a8   :  { %2797 = vmatpush3.bf16.msra.mxu1 %v3431_v31 }
 0x2a9   :  { %2798 = vmatprep.subr.bf16.mxu1 %v3432_v32  ;;  %v1253_v32 = vld [vmem:[#allocation28 + $0x10] sm:$0xff] }
 0x2ac   :  { %2799 = vmatpush3.bf16.msra.mxu1 %v3433_v33  ;;  %v1254_v33 = vld [vmem:[#allocation28 + $0x18] sm:$0xff] }
 0x2ad   :  { %2800 = vmatprep.subr.bf16.mxu1 %v3434_v34 }
 0x2b0   :  { %2801 = vmatpush3.bf16.msra.mxu1 %v3435_v35 }
 0x2b1   :  { %2802 = vmatprep.subr.bf16.mxu1 %v3436_v38 }
 0x2b4   :  { %2803 = vmatpush3.bf16.msra.mxu1 %v3437_v40 }
 0x2b5   :  { %2804 = vmatprep.subr.bf16.mxu1 %v3438_v41 }
 0x2b8   :  { %2805 = vmatpush3.bf16.msra.mxu1 %v3439_v42  ;;  %v4406_v42 = vpack.c.bf16 %v1254_v33, %v1253_v32 }
 0x2b9   :  { %2966 = vmatprep.subr.bf16.mxu1 %v3976_v51 }
 0x2bb   :  { %1435 = vmatmul.mubr.bf16.vlgmr.msra.gmra.mrb[8].mxu1 %v3440_v43 }
 0x2bc   :  { %2982 = vmatprep.mubr.msk.bf16.mxu1 %vm3977_vm1, %v3976_v51  ;;  %2967 = vmatpush3.bf16.msra.mxu1 %v3443_v50 }
 0x2bd   :  { %2968 = vmatprep.subr.bf16.mxu1 %v3976_v51 }
 0x2c0   :  { %2969 = vmatpush3.bf16.msra.mxu1 %v3444_v53 }
 0x2c1   :  { %2970 = vmatprep.subr.bf16.mxu1 %v3976_v51 }
 0x2c4   :  { %2971 = vmatpush3.bf16.msra.mxu1 %v3445_v54  ;;  %v674_v54 = vrot.slane %v4395_v21, %v4340_v39 }
 0x2c5   :  { %2972 = vmatprep.subr.bf16.mxu1 %v3976_v51 }
 0x2c8   :  { %2973 = vmatpush3.bf16.msra.mxu1 %v3446_v56  ;;  %v2718_v56 = vld [vmem:[#allocation16] ss:$0 sm:$0xff] }
 0x2c9   :  { %2974 = vmatprep.subr.bf16.mxu1 %v3976_v51 }
 0x2cc   :  { %2975 = vmatpush3.bf16.msra.mxu1 %v3447_v57 }
 0x2cd   :  { %2976 = vmatprep.subr.bf16.mxu1 %v3976_v51 }
 0x2d0   :  { %2977 = vmatpush3.bf16.msra.mxu1 %v3448_v59 }
 0x2d1   :  { %2978 = vmatprep.subr.bf16.mxu1 %v3976_v51 }
 0x2d4   :  { %2979 = vmatpush3.bf16.msra.mxu1 %v3449_v60 }
 0x2d5   :  { %2980 = vmatprep.subr.bf16.mxu1 %v3976_v51 }
 0x2d8   :  { %2981 = vmatpush3.bf16.msra.mxu1 %v3450_v62 }
 0x2d9   :  { %3183 = vmatprep.subr.bf16.mxu1 %v4376_v6 }
 0x34e   :  { %v1142_v7 = vpop.f32.mrb[0].mxu1  ;;  %v4379_v8 = vpop.f32.mrb[4].mxu0 }
 0x34f   :  { %v4381_v9 = vpop.f32.mrb[1].mxu1  ;;  %v4383_v10 = vpop.f32.mrb[5].mxu0  ;;  %v1143_v29 = vadd.f32 %v1142_v7, %v670_v22 }
 0x350   :  { %v1146_v11 = vpop.f32.mrb[2].mxu1  ;;  %v4385_v12 = vpop.f32.mrb[6].mxu0  ;;  %v1145_v59 = vadd.f32 %v4381_v9, %v674_v54 }
 0x351   :  { %v4387_v13 = vpop.f32.mrb[3].mxu1  ;;  %v4389_v14 = vpop.f32.mrb[7].mxu0  ;;  %v1147_v34 = vadd.f32 %v1146_v11, %v670_v22 }
 0x36e   :  { %v2784_v15 = vpop.f32.mrb[4].mxu1 }
 0x36f   :  { %v2785_v16 = vpop.f32.mrb[5].mxu1 }
 0x370   :  { %v4391_v17 = vadd.f32 %v2785_v16, %v2784_v15  ;;  %v2787_v18 = vpop.f32.mrb[6].mxu1 }
 0x371   :  { %v2788_v19 = vpop.f32.mrb[7].mxu1 }
 0x372   :  { %v4393_v20 = vadd.f32 %v2788_v19, %v2787_v18 }
 0x38e   :  { %v2806_v23 = vpop.f32.mrb[8].mxu1 }
 0x38f   :  { %v2807_v25 = vpop.f32.mrb[9].mxu1 }
 0x390   :  { %v2808_v26 = vadd.f32 %v2807_v25, %v2806_v23  ;;  %v2809_v27 = vpop.f32.mrb[10].mxu1 }
 0x391   :  { %v2810_v28 = vpop.f32.mrb[11].mxu1 }
 0x392   :  { %v1437_v30 = vadd.f32 %v2808_v26, %v2691_v24  ;;  %v2811_v31 = vadd.f32 %v2810_v28, %v2809_v27  ;;  %v2714_v26 = vld [vmem:[#allocation23] ss:$0 sm:$0xff] }
 0x394   :  { %v1440_v35 = vadd.f32 %v2811_v31, %v2691_v24  ;;  %v4399_v38 = vadd.f32 %v1437_v30, %v1143_v29  ;;  %v2715_v30 = vld [vmem:[#allocation25] ss:$0 sm:$0xff] }
 0x396   :  { %v4401_v40 = vadd.f32 %v1440_v35, %v1147_v34  ;;  %2946 = vmatprep.mubr.f32.mxu0 %v4399_v38  ;;  %v1445_v41 = vmul.f32 %v4399_v38, %v4399_v38 }
 0x398   :  { %2947 = vmatmul.mubr.f32.vlgmr.msra.gmra.mrb[8].mxu0 %v4401_v40  ;;  %v1446_v43 = vmul.f32 %v4401_v40, %v4401_v40 }
 0x399   :  { %2949 = vmatprep.mubr.f32.mxu0 %v1445_v41  ;;  %3145 = vmatpush3.bf16.msra.mxu0 %v4376_v6 }
 0x39a   :  { %3147 = vmatprep.subr.bf16.mxu0 %v4406_v42 }
 0x39c   :  { %2950 = vmatmul.mubr.f32.gmra.mrb[10].mxu0 %v1446_v43 }
 0x39d   :  { %3149 = vmatpush3.bf16.msra.mxu0 %v4406_v42 }
 0x39e   :  { %3151 = vmatprep.subr.bf16.mxu0 %v4344_v47 }
 0x46b   :  { %v2948_v44 = vpop.f32.mrb[8].mxu0 }
 0x46c   :  { %v1513_v45 = vpop.f32.mrb[9].mxu0 }
 0x46d   :  { %2960 = vmatprep.mubr.msk.f32.mxu0 %vm1532_vm0, %v1513_v45 }
 0x46e   :  { %2961 = vmatmul.mubr.msk.f32.vlgmr.msra.gmra.mrb[12].mxu0 %vm1532_vm0, %v2948_v44 }
 0x46f   :  { %v2951_v46 = vpop.f32.mrb[10].mxu0  ;;  %3153 = vmatpush3.bf16.msra.mxu0 %v4344_v47 }
 0x470   :  { %v1523_v48 = vpop.f32.mrb[11].mxu0  ;;  %3155 = vmatprep.subr.bf16.mxu0 %v4346_v49 }
 0x471   :  { %2963 = vmatprep.mubr.msk.f32.mxu0 %vm1532_vm0, %v1523_v48 }
 0x472   :  { %2964 = vmatmul.mubr.msk.f32.gmra.mrb[14].mxu0 %vm1532_vm0, %v2951_v46 }
 0x473   :  { %3157 = vmatpush3.bf16.msra.mxu0 %v4346_v49 }
 0x474   :  { %3159 = vmatprep.subr.bf16.mxu0 %v4351_v52 }
 0x477   :  { %3161 = vmatpush3.bf16.msra.mxu0 %v4351_v52 }
 0x478   :  { %3163 = vmatprep.subr.bf16.mxu0 %v4355_v55 }
 0x47b   :  { %3165 = vmatpush3.bf16.msra.mxu0 %v4355_v55 }
 0x47c   :  { %3167 = vmatprep.subr.bf16.mxu0 %v4359_v58 }
 0x47f   :  { %3169 = vmatpush3.bf16.msra.mxu0 %v4359_v58 }
 0x480   :  { %3171 = vmatprep.subr.bf16.mxu0 %v4363_v61 }
 0x483   :  { %3173 = vmatpush3.bf16.msra.mxu0 %v4363_v61 }
 0x484   :  { %3175 = vmatprep.subr.bf16.mxu0 %v4368_v0 }
 0x487   :  { %3177 = vmatpush3.bf16.msra.mxu0 %v4368_v0 }
 0x488   :  { %3179 = vmatprep.subr.bf16.mxu0 %v4372_v3 }
 0x48b   :  { %3181 = vmatpush3.bf16.msra.mxu0 %v4372_v3 }
 0x48c   :  { %3191 = vmatprep.subr.bf16.mxu0 %v4344_v47 }
 0x541   :  { %v2962_v63 = vpop.f32.mrb[12].mxu0 }
 0x542   :  { %v1611_v1 = vpop.f32.mrb[13].mxu0  ;;  %v1631_v2 = vmul.f32 %v2962_v63, %v2962_v63  ;;  %v1637_v23 = vsub.f32 %v4401_v40, %v2962_v63 }
 0x543   :  { %v1630_v4 = vmul.f32 %v1611_v1, %v1611_v1  ;;  %v1636_v25 = vsub.f32 %v4399_v38, %v1611_v1  ;;  %v1149_v1 = vadd.f32 %v4387_v13, %v674_v54  ;;  %v3455_v13 = vld [vmem:[#allocation14 + $0x60] sm:$0xff]  }
 0x545   :  { %v2965_v5 = vpop.f32.mrb[14].mxu0 }
 0x546   :  { %v1633_v7 = vsub.f32 %v2965_v5, %v1631_v2  ;;  %v1621_v11 = vpop.f32.mrb[15].mxu0 }
 0x547   :  { %v1632_v15 = vsub.f32 %v1621_v11, %v1630_v4 }
 0x548   :  { %v1635_v16 = vmax.f32 %v1633_v7, 0.0 }
 0x549   :  { %v1634_v18 = vmax.f32 %v1632_v15, 0.0  ;;  %v3456_v15 = vld [vmem:[#allocation14 + $0x68] sm:$0xff]  }
 0x54a   :  { %v1639_v19 = vadd.f32 1e-05, %v1635_v16  ;;  %v3457_v16 = vld [vmem:[#allocation14 + $0x70] sm:$0xff]  }
 0x54b   :  { %v1638_v22 = vadd.f32 1e-05, %v1634_v18  ;;  %v3458_v18 = vld [vmem:[#allocation14 + $0x78] sm:$0xff]  }
 0x54c   :  { %3499 = vrsqrt.f32 %v1639_v19 }
 0x54d   :  { %3501 = vrsqrt.f32 %v1638_v22 }
 0x556   :  { %v3500_v24 = vpop.eup %3499 }
 0x557   :  { %v3502_v27 = vpop.eup %3501  ;;  %v1643_v28 = vmul.f32 %v3500_v24, %v1637_v23 }
 0x558   :  { %v1642_v29 = vmul.f32 %v3502_v27, %v1636_v25 }
 0x559   :  { %v1652_v31 = vmul.f32 %v2714_v26, %v1643_v28 }
 0x55a   :  { %v1651_v32 = vmul.f32 %v2714_v26, %v1642_v29 }
 0x55b   :  { %v1661_v33 = vadd.f32 %v2715_v30, %v1652_v31 }
 0x55c   :  { %v1660_v34 = vadd.f32 %v2715_v30, %v1651_v32 }
 0x55d   :  { %v2717_v35 = vmul.f32 -1.442695, %v1661_v33 }
 0x55e   :  { %v2716_v41 = vmul.f32 -1.442695, %v1660_v34 }
 0x55f   :  { %3503 = vpow2.f32 %v2717_v35  ;;  %v2731_v35 = vld [vmem:[#allocation23 + $0x1] ss:$0 sm:$0xff] }
 0x560   :  { %3505 = vpow2.f32 %v2716_v41 }
 0x569   :  { %v3504_v43 = vpop.eup %3503 }
 0x56a   :  { %v3506_v44 = vpop.eup %3505  ;;  %v1669_v45 = vadd.f32 1.0, %v3504_v43 }
 0x56b   :  { %v1668_v40 = vadd.f32 1.0, %v3506_v44 }
 0x56c   :  { %3507 = vrcp.f32 %v1669_v45  ;;  %v2732_v45 = vld [vmem:[#allocation25 + $0x1] ss:$0 sm:$0xff] }
 0x56d   :  { %3509 = vrcp.f32 %v1668_v40 }
 0x576   :  { %v3508_v38 = vpop.eup %3507 }
 0x577   :  { %v3510_v46 = vpop.eup %3509  ;;  %v1675_v48 = vmul.f32 %v3508_v38, %v1661_v33 }
 0x578   :  { %v1674_v50 = vmul.f32 %v3510_v46, %v1660_v34 }
 0x57a   :  { %v1692_v53 = vpack.c.bf16 %v1675_v48, %v1674_v50 }
 0x57c   :  { %2983 = vmatmul.mubr.bf16.vlgmr.msra.gmra.mrb[12].mxu1 %v1692_v53 }
 0x57d   :  { %3185 = vmatpush3.bf16.msra.mxu1 %v4376_v6 }
 0x57e   :  { %3187 = vmatprep.subr.bf16.mxu1 %v4406_v42 }
 0x581   :  { %3189 = vmatpush3.bf16.msra.mxu1 %v4406_v42 }
 0x582   :  { %3038 = vmatprep.subr.bf16.mxu1 %v3976_v51 }
 0x64f   :  { %v1782_v57 = vpop.f32.mrb[12].mxu1 }
 0x650   :  { %v1783_v60 = vadd.f32 %v2718_v56, %v1782_v57  ;;  %v2984_v62 = vpop.f32.mrb[13].mxu1 }
 0x651   :  { %v1785_v63 = vpop.f32.mrb[14].mxu1 }
 0x652   :  { %v4456_v2 = vadd.f32 %v1783_v60, %v1145_v59  ;;  %v1786_v4 = vadd.f32 %v2718_v56, %v1785_v63  ;;  %v2985_v5 = vpop.f32.mrb[15].mxu1 }
 0x654   :  { %v4458_v7 = vadd.f32 %v1786_v4, %v1149_v1  ;;  %3018 = vmatprep.mubr.f32.mxu0 %v4456_v2  ;;  %v1791_v11 = vmul.f32 %v4456_v2, %v4456_v2  ;;  %v677_v4 = vsub.s32 2, %v4334_v36 }
 0x656   :  { %3019 = vmatmul.mubr.f32.vlgmr.msra.gmra.mrb[16].mxu0 %v4458_v7  ;;  %v1792_v9 = vmul.f32 %v4458_v7, %v4458_v7  ;;  %v678_v5 = vrot.slane %v4395_v21, %v677_v4 }
 0x657   :  { %3021 = vmatprep.mubr.f32.mxu0 %v1791_v11  ;;  %3193 = vmatpush3.bf16.msra.mxu0 %v4344_v47 }
 0x658   :  { %3195 = vmatprep.subr.bf16.mxu0 %v4346_v49 }
 0x65a   :  { %3022 = vmatmul.mubr.f32.gmra.mrb[18].mxu0 %v1792_v9  ;;  %v1186_v9 = vadd.f32 %v4379_v8, %v678_v5 }
 0x65b   :  { %3197 = vmatpush3.bf16.msra.mxu0 %v4346_v49 }
 0x65c   :  { %3199 = vmatprep.subr.bf16.mxu0 %v4351_v52 }
 0x65f   :  { %3201 = vmatpush3.bf16.msra.mxu0 %v4351_v52 }
 0x660   :  { %3203 = vmatprep.subr.bf16.mxu0 %v4355_v55 }
 0x663   :  { %3205 = vmatpush3.bf16.msra.mxu0 %v4355_v55 }
 0x664   :  { %3207 = vmatprep.subr.bf16.mxu0 %v4359_v58 }
 0x667   :  { %3209 = vmatpush3.bf16.msra.mxu0 %v4359_v58  ;;  %v3451_v58 = vld [vmem:[#allocation14 + $0x40] sm:$0xff]  }
 0x668   :  { %3211 = vmatprep.subr.bf16.mxu0 %v4363_v61 }
 0x66b   :  { %3213 = vmatpush3.bf16.msra.mxu0 %v4363_v61  ;;  %v3452_v61 = vld [vmem:[#allocation14 + $0x48] sm:$0xff]  }
 0x66c   :  { %3215 = vmatprep.subr.bf16.mxu0 %v4368_v0 }
 0x66f   :  { %3217 = vmatpush3.bf16.msra.mxu0 %v4368_v0  ;;  %v3453_v0 = vld [vmem:[#allocation14 + $0x50] sm:$0xff]  }
 0x670   :  { %3219 = vmatprep.subr.bf16.mxu0 %v4372_v3 }
 0x673   :  { %3221 = vmatpush3.bf16.msra.mxu0 %v4372_v3  ;;  %v3454_v3 = vld [vmem:[#allocation14 + $0x58] sm:$0xff]  }
 0x729   :  { %v3020_v47 = vpop.f32.mrb[16].mxu0 }
 0x72a   :  { %v1859_v49 = vpop.f32.mrb[17].mxu0 }
 0x72b   :  { %3032 = vmatprep.mubr.msk.f32.mxu1 %vm1532_vm0, %v1859_v49 }
 0x72c   :  { %3033 = vmatmul.mubr.msk.f32.vlgmr.msra.gmra.mrb[16].mxu1 %vm1532_vm0, %v3020_v47 }
 0x72d   :  { %v3023_v52 = vpop.f32.mrb[18].mxu0  ;;  %3039 = vmatpush3.bf16.msra.mxu1 %v3451_v58 }
 0x72e   :  { %v1869_v55 = vpop.f32.mrb[19].mxu0  ;;  %3040 = vmatprep.subr.bf16.mxu1 %v3976_v51 }
 0x72f   :  { %3035 = vmatprep.mubr.msk.f32.mxu1 %vm1532_vm0, %v1869_v55  ;;  %v1190_v55 = vadd.f32 %v4385_v12, %v678_v5  ;;  %v2749_v5 = vld [vmem:[#allocation25 + $0x2] ss:$0 sm:$0xff] }
 0x730   :  { %3036 = vmatmul.mubr.msk.f32.gmra.mrb[18].mxu1 %vm1532_vm0, %v3023_v52 }
 0x731   :  { %3054 = vmatprep.mubr.msk.bf16.mxu1 %vm3977_vm1, %v3976_v51  ;;  %3041 = vmatpush3.bf16.msra.mxu1 %v3452_v61 }
 0x732   :  { %3042 = vmatprep.subr.bf16.mxu1 %v3976_v51 }
 0x735   :  { %3043 = vmatpush3.bf16.msra.mxu1 %v3453_v0 }
 0x736   :  { %3044 = vmatprep.subr.bf16.mxu1 %v3976_v51 }
 0x739   :  { %3045 = vmatpush3.bf16.msra.mxu1 %v3454_v3 }
 0x73a   :  { %3046 = vmatprep.subr.bf16.mxu1 %v3976_v51 }
 0x73d   :  { %3047 = vmatpush3.bf16.msra.mxu1 %v3455_v13 }
 0x73e   :  { %3048 = vmatprep.subr.bf16.mxu1 %v3976_v51 }
 0x741   :  { %3049 = vmatpush3.bf16.msra.mxu1 %v3456_v15 }
 0x742   :  { %3050 = vmatprep.subr.bf16.mxu1 %v3976_v51 }
 0x745   :  { %3051 = vmatpush3.bf16.msra.mxu1 %v3457_v16  ;;  %v3459_v16 = vld [vmem:[#allocation17] ss:$8 sps:$4 sm:$0xff]  }
 0x746   :  { %3052 = vmatprep.subr.bf16.mxu1 %v3976_v51 }
 0x749   :  { %3053 = vmatpush3.bf16.msra.mxu1 %v3458_v18  ;;  %v3461_v18 = vld [vmem:[#allocation17 + $0x4] ss:$8 sps:$4 sm:$0xff]  }
 0x74a   :  { %3223 = vmatprep.subr.bf16.mxu1 %v4376_v6 }
 0x7ff   :  { %v3034_v19 = vpop.f32.mrb[16].mxu1 }
 0x800   :  { %v1956_v22 = vpop.f32.mrb[17].mxu1  ;;  %v1976_v23 = vmul.f32 %v3034_v19, %v3034_v19  ;;  %v1982_v33 = vsub.f32 %v4458_v7, %v3034_v19  ;;  %v2735_v7 = vld [vmem:[#allocation16 + $0x1] ss:$0 sm:$0xff] }
 0x801   :  { %v1975_v24 = vmul.f32 %v1956_v22, %v1956_v22  ;;  %v1981_v34 = vsub.f32 %v4456_v2, %v1956_v22  ;;  %v3464_v19 = vld [vmem:[#allocation17 + $0x14] ss:$8 sps:$4 sm:$0xff]   ;;  %v3462_v22 = vld [vmem:[#allocation17 + $0x10] ss:$8 sps:$4 sm:$0xff]  }
 0x803   :  { %v3037_v25 = vpop.f32.mrb[18].mxu1 }
 0x804   :  { %v1978_v26 = vsub.f32 %v3037_v25, %v1976_v23  ;;  %v1966_v27 = vpop.f32.mrb[19].mxu1  ;;  %v3467_v23 = vld [vmem:[#allocation17 + $0x24] ss:$8 sps:$4 sm:$0xff]   ;;  %v3465_v25 = vld [vmem:[#allocation17 + $0x20] ss:$8 sps:$4 sm:$0xff]  }
 0x805   :  { %v1977_v28 = vsub.f32 %v1966_v27, %v1975_v24  ;;  %v3978_v24 = vmov 0   ;;  %v3468_v27 = vld [vmem:[#allocation17 + $0x30] ss:$8 sps:$4 sm:$0xff]  }
 0x806   :  { %v1980_v29 = vmax.f32 %v1978_v26, 0.0  ;;  %3260 = vset.pattern.permute.xlu0 %v3978_v24  ;;  %v3470_v26 = vld [vmem:[#allocation17 + $0x34] ss:$8 sps:$4 sm:$0xff]  }
 0x807   :  { %v1979_v30 = vmax.f32 %v1977_v28, 0.0  ;;  %v3473_v28 = vld [vmem:[#allocation17 + $0x44] ss:$8 sps:$4 sm:$0xff]  }
 0x808   :  { %v1984_v31 = vadd.f32 1e-05, %v1980_v29  ;;  %v3471_v29 = vld [vmem:[#allocation17 + $0x40] ss:$8 sps:$4 sm:$0xff]  }
 0x809   :  { %v1983_v32 = vadd.f32 1e-05, %v1979_v30  ;;  %v3476_v30 = vld [vmem:[#allocation17 + $0x54] ss:$8 sps:$4 sm:$0xff]  }
 0x80a   :  { %3511 = vrsqrt.f32 %v1984_v31  ;;  %v3474_v31 = vld [vmem:[#allocation17 + $0x50] ss:$8 sps:$4 sm:$0xff]  }
 0x80b   :  { %3513 = vrsqrt.f32 %v1983_v32  ;;  %v3479_v32 = vld [vmem:[#allocation17 + $0x64] ss:$8 sps:$4 sm:$0xff]  }
 0x814   :  { %v3512_v51 = vpop.eup %3511 }
 0x815   :  { %v3514_v41 = vpop.eup %3513  ;;  %v1988_v43 = vmul.f32 %v3512_v51, %v1982_v33  ;;  %v3477_v33 = vld [vmem:[#allocation17 + $0x60] ss:$8 sps:$4 sm:$0xff]   ;;  %v3482_v51 = vld [vmem:[#allocation17 + $0x74] ss:$8 sps:$4 sm:$0xff]  }
 0x816   :  { %v1987_v44 = vmul.f32 %v3514_v41, %v1981_v34  ;;  %v3480_v34 = vld [vmem:[#allocation17 + $0x70] ss:$8 sps:$4 sm:$0xff]  }
 0x817   :  { %v1998_v40 = vmul.f32 %v2731_v35, %v1988_v43  ;;  %v2529_v41 = vld [vmem:[#allocation7 + $0x8] sm:$0xff] }
 0x818   :  { %v1997_v38 = vmul.f32 %v2731_v35, %v1987_v44  ;;  %v2528_v35 = vld [vmem:[#allocation7] sm:$0xff] }
 0x819   :  { %v2008_v46 = vadd.f32 %v2732_v45, %v1998_v40  ;;  %2532 = vperm.xlu0 %3260, %v2528_v35  }
 0x81a   :  { %v2007_v48 = vadd.f32 %v2732_v45, %v1997_v38 }
 0x81b   :  { %v2734_v50 = vmul.f32 -1.442695, %v2008_v46 }
 0x81c   :  { %v2733_v53 = vmul.f32 -1.442695, %v2007_v48 }
 0x81d   :  { %3515 = vpow2.f32 %v2734_v50  ;;  %2537 = vperm.xlu0 %3260, %v2529_v41  }
 0x81e   :  { %3517 = vpow2.f32 %v2733_v53 }
 0x827   :  { %v3516_v54 = vpop.eup %3515 }
 0x828   :  { %v3518_v56 = vpop.eup %3517  ;;  %v2016_v57 = vadd.f32 1.0, %v3516_v54 }
 0x829   :  { %v2015_v59 = vadd.f32 1.0, %v3518_v56 }
 0x82a   :  { %3519 = vrcp.f32 %v2016_v57 }
 0x82b   :  { %3521 = vrcp.f32 %v2015_v59 }
 0x834   :  { %v3520_v60 = vpop.eup %3519 }
 0x835   :  { %v3522_v62 = vpop.eup %3521  ;;  %v2022_v63 = vmul.f32 %v3520_v60, %v2008_v46 }
 0x836   :  { %v2021_v1 = vmul.f32 %v3522_v62, %v2007_v48 }
 0x838   :  { %v2040_v2 = vpack.c.bf16 %v2022_v63, %v2021_v1  ;;  %v2748_v63 = vld [vmem:[#allocation23 + $0x2] ss:$0 sm:$0xff] }
 0x83a   :  { %3055 = vmatmul.mubr.bf16.vlgmr.msra.gmra.mrb[20].mxu1 %v2040_v2 }
 0x83b   :  { %3225 = vmatpush3.bf16.msra.mxu1 %v4376_v6 }
 0x83c   :  { %3227 = vmatprep.subr.bf16.mxu1 %v4406_v42 }
 0x83f   :  { %3229 = vmatpush3.bf16.msra.mxu1 %v4406_v42 }
 0x840   :  { %2481 = vmatprep.subr.bf16.mxu1 %v3461_v18 }
 0x90d   :  { %v2131_v11 = vpop.f32.mrb[20].mxu1 }
 0x90e   :  { %v2132_v47 = vadd.f32 %v2735_v7, %v2131_v11  ;;  %v3056_v49 = vpop.f32.mrb[21].mxu1 }
 0x90f   :  { %v2134_v52 = vpop.f32.mrb[22].mxu1 }
 0x910   :  { %v4504_v58 = vadd.f32 %v2132_v47, %v1186_v9  ;;  %v2135_v6 = vadd.f32 %v2735_v7, %v2134_v52  ;;  %v3057_v61 = vpop.f32.mrb[23].mxu1 }
 0x912   :  { %v4506_v0 = vadd.f32 %v2135_v6, %v1190_v55  ;;  %3090 = vmatprep.mubr.f32.mxu0 %v4504_v58  ;;  %v2140_v42 = vmul.f32 %v4504_v58, %v4504_v58 }
 0x914   :  { %3091 = vmatmul.mubr.f32.vlgmr.msra.gmra.mrb[20].mxu0 %v4506_v0  ;;  %v2141_v8 = vmul.f32 %v4506_v0, %v4506_v0 }
 0x915   :  { %3093 = vmatprep.mubr.f32.mxu0 %v2140_v42 }
 0x918   :  { %3094 = vmatmul.mubr.f32.gmra.mrb[22].mxu0 %v2141_v8 }
 0x9e7   :  { %v3092_v3 = vpop.f32.mrb[20].mxu0 }
 0x9e8   :  { %v2208_v12 = vpop.f32.mrb[21].mxu0 }
 0x9e9   :  { %3104 = vmatprep.mubr.msk.f32.mxu1 %vm1532_vm0, %v2208_v12 }
 0x9ea   :  { %3105 = vmatmul.mubr.msk.f32.vlgmr.msra.gmra.mrb[24].mxu1 %vm1532_vm0, %v3092_v3 }
 0x9eb   :  { %v3095_v13 = vpop.f32.mrb[22].mxu0  ;;  %2482 = vmatpush1.bf16.msra.mxu1 %v3459_v16  ;;  %v2389_v16 = vld [vmem:[#allocation19] sm:$0x3] }
 0x9ec   :  { %v2218_v15 = vpop.f32.mrb[23].mxu0  ;;  %2483 = vmatprep.subr.bf16.mxu1 %v3464_v19  ;;  %v2394_v19 = vrot.slane %v2389_v16, %v4337_v37 }
 0x9ed   :  { %3107 = vmatprep.mubr.msk.f32.mxu1 %vm1532_vm0, %v2218_v15  ;;  %v685_v15 = vsub.s32 4, %v4334_v36 }
 0x9ee   :  { %3108 = vmatmul.mubr.msk.f32.gmra.mrb[26].mxu1 %vm1532_vm0, %v3095_v13  ;;  %v681_v13 = vsub.s32 3, %v4334_v36 }
 0x9ef   :  { %2513 = vmatprep.mubr.bf16.mxu1 %v3978_v24  ;;  %2484 = vmatpush1.bf16.msra.mxu1 %v3462_v22  ;;  %v686_v22 = vrot.slane %v4395_v21, %v685_v15  ;;  %v2533_v24 = vpop.permute.xlu0 %2532 }
 0x9f0   :  { %2485 = vmatprep.subr.bf16.mxu1 %v3467_v23  ;;  %v682_v18 = vrot.slane %v4395_v21, %v681_v13  ;;  %v2398_v23 = vrot.slane %v2389_v16, %v4340_v39 }
 0x9f1   :  { %v1232_v37 = vadd.f32 %v4393_v20, %v686_v22 }
 0x9f2   :  { %v1192_v36 = vadd.f32 %v4389_v14, %v682_v18 }
 0x9f3   :  { %2486 = vmatpush1.bf16.msra.mxu1 %v3465_v25  ;;  %v2538_v41 = vpop.permute.xlu0 %2537 }
 0x9f4   :  { %2487 = vmatprep.subr.bf16.mxu1 %v3470_v26  ;;  %v1188_v26 = vadd.f32 %v4383_v10, %v682_v18 }
 0x9f7   :  { %2488 = vmatpush1.bf16.msra.mxu1 %v3468_v27 }
 0x9f8   :  { %2489 = vmatprep.subr.bf16.mxu1 %v3473_v28 }
 0x9fb   :  { %2490 = vmatpush1.bf16.msra.mxu1 %v3471_v29  ;;  %v1229_v29 = vadd.f32 %v4391_v17, %v686_v22 }
 0x9fc   :  { %2491 = vmatprep.subr.bf16.mxu1 %v3476_v30 }
 0x9ff   :  { %2492 = vmatpush1.bf16.msra.mxu1 %v3474_v31 }
 0xa00   :  { %2493 = vmatprep.subr.bf16.mxu1 %v3479_v32 }
 0xa03   :  { %2494 = vmatpush1.bf16.msra.mxu1 %v3477_v33 }
 0xa04   :  { %2495 = vmatprep.subr.bf16.mxu1 %v3482_v51 }
 0xa07   :  { %2496 = vmatpush1.bf16.msra.mxu1 %v3480_v34 }
 0xabd   :  { %v3106_v43 = vpop.f32.mrb[24].mxu1 }
 0xabe   :  { %v2305_v44 = vpop.f32.mrb[25].mxu1  ;;  %v2325_v45 = vmul.f32 %v3106_v43, %v3106_v43  ;;  %v2331_v59 = vsub.f32 %v4506_v0, %v3106_v43 }
 0xabf   :  { %v2324_v40 = vmul.f32 %v2305_v44, %v2305_v44  ;;  %v2330_v62 = vsub.f32 %v4504_v58, %v2305_v44 }
 0xac1   :  { %v3109_v38 = vpop.f32.mrb[26].mxu1 }
 0xac2   :  { %v2327_v46 = vsub.f32 %v3109_v38, %v2325_v45  ;;  %v2315_v48 = vpop.f32.mrb[27].mxu1 }
 0xac3   :  { %v2326_v50 = vsub.f32 %v2315_v48, %v2324_v40 }
 0xac4   :  { %v2329_v53 = vmax.f32 %v2327_v46, 0.0 }
 0xac5   :  { %v2328_v54 = vmax.f32 %v2326_v50, 0.0 }
 0xac6   :  { %v2333_v56 = vadd.f32 1e-05, %v2329_v53 }
 0xac7   :  { %v2332_v57 = vadd.f32 1e-05, %v2328_v54 }
 0xac8   :  { %3523 = vrsqrt.f32 %v2333_v56 }
 0xac9   :  { %3525 = vrsqrt.f32 %v2332_v57 }
 0xad2   :  { %v3524_v60 = vpop.eup %3523 }
 0xad3   :  { %v3526_v1 = vpop.eup %3525  ;;  %v2337_v2 = vmul.f32 %v3524_v60, %v2331_v59 }
 0xad4   :  { %v2336_v4 = vmul.f32 %v3526_v1, %v2330_v62 }
 0xad5   :  { %v2347_v7 = vmul.f32 %v2748_v63, %v2337_v2 }
 0xad6   :  { %v2346_v11 = vmul.f32 %v2748_v63, %v2336_v4 }
 0xad7   :  { %v2357_v9 = vadd.f32 %v2749_v5, %v2347_v7 }
 0xad8   :  { %v2356_v47 = vadd.f32 %v2749_v5, %v2346_v11 }
 0xad9   :  { %v2751_v49 = vmul.f32 -1.442695, %v2357_v9 }
 0xada   :  { %v2750_v52 = vmul.f32 -1.442695, %v2356_v47 }
 0xadb   :  { %3527 = vpow2.f32 %v2751_v49 }
 0xadc   :  { %3529 = vpow2.f32 %v2750_v52 }
 0xae5   :  { %v3528_v55 = vpop.eup %3527 }
 0xae6   :  { %v3530_v6 = vpop.eup %3529  ;;  %v2365_v61 = vadd.f32 1.0, %v3528_v55 }
 0xae7   :  { %v2364_v0 = vadd.f32 1.0, %v3530_v6 }
 0xae8   :  { %3531 = vrcp.f32 %v2365_v61 }
 0xae9   :  { %3533 = vrcp.f32 %v2364_v0 }
 0xaf2   :  { %v3532_v58 = vpop.eup %3531 }
 0xaf3   :  { %v3534_v42 = vpop.eup %3533  ;;  %v2371_v8 = vmul.f32 %v3532_v58, %v2357_v9 }
 0xaf4   :  { %v2370_v3 = vmul.f32 %v3534_v42, %v2356_v47 }
 0xaf6   :  { %v2388_v12 = vpack.c.bf16 %v2371_v8, %v2370_v3 }
 0xaf8   :  { %2514 = vmatmul.mubr.bf16.vlgmr.msra.gmra.mrb[28].mxu1 %v2388_v12 }
 0xbcb   :  { %v2515_v25 = vpop.f32.mrb[28].mxu1 }
 0xbcc   :  { %v2516_v27 = vadd.f32 %v2515_v25, %v2394_v19  ;;  %v2517_v28 = vpop.f32.mrb[29].mxu1 }
 0xbcd   :  { %v2518_v30 = vadd.f32 %v2517_v28, %v2398_v23  ;;  %v2519_v31 = vpop.f32.mrb[30].mxu1 }
 0xbce   :  { %v2524_v32 = vadd.f32 %v2516_v27, %v1188_v26  ;;  %v2520_v33 = vadd.f32 %v2519_v31, %v2394_v19  ;;  %v2521_v51 = vpop.f32.mrb[31].mxu1 }
 0xbcf   :  { %v2525_v21 = vadd.f32 %v2518_v30, %v1229_v29  ;;  %v2522_v34 = vadd.f32 %v2521_v51, %v2398_v23 }
 0xbd0   :  { %v2540_v39 = vmul.f32 %v2533_v24, %v2524_v32  ;;  %v2526_v35 = vadd.f32 %v2520_v33, %v1192_v36 }
 0xbd1   :  { %v2541_v10 = vmul.f32 %v2533_v24, %v2525_v21  ;;  %v2527_v43 = vadd.f32 %v2522_v34, %v1232_v37 }
 0xbd2   :  { %2544 = vst [vmem:[#allocation29] sm:$0xff] %v2540_v39  ;;  %v2542_v17 = vmul.f32 %v2538_v41, %v2526_v35 }
 0xbd3   :  { %2545 = vst [vmem:[#allocation29 + $0x8] sm:$0xff] %v2541_v10  ;;  %v2543_v44 = vmul.f32 %v2538_v41, %v2527_v43 }
 0xbd4   :  { %2546 = vst [vmem:[#allocation29 + $0x10] sm:$0xff] %v2542_v17 }
 0xbd5   :  { %2547 = vst [vmem:[#allocation29 + $0x18] sm:$0xff] %v2543_v44 }
 0xbd6   :  { %3920 = shalt.err (!%p3917_p0)
}
 0xbd7   :  { %s3921_s28 = scalar_lea.hbm %s4560_s17, 512 }
 0xbd8   :  { %p3922_p1 = scmp.ne.s32.totalorder %s4560_s17, %s3921_s28  ;;  %p3925_p2 = scmp.lt.u32.totalorder %s3921_s28, %s4560_s17 }
 0xbda   :  { %p3927_p3 = pnand %p3925_p2, %p3922_p1 }
 0xbdc   :  { %3930 = shalt.err (!%p3927_p3)
}
 0xbdd   :  { %s3980_s5 = smov 256  }
 0xbde   :  { %2559 = dma.vmem_to_hbm [thread:$0]  %s2554_s7, 512, %s4560_s17, [#allocation4], %s3980_s5, %s3980_s5, %s3965_s23  }
 0xbdf   :  { %3949 = dma.done.wait [#allocation4], 512  }
 0xbe0   :  { %3950 = vsyncadd [#allocation4], 4294966784 }
 0xbe1   :  { %2563 = vsyncpa [#allocation3], 1 }
 0xbe2   :  { %2564 = vsyncpa [#allocation6], 1 }
 0xbe3   :  { %2565 = vsyncpa [#allocation9], 1 }
 0xbe4   :  { %2566 = vsyncpa [#allocation12], 1 }
 0xbe5   :  { %2567 = vsyncpa [#allocation15], 1 }
 0xbe6   :  { %2568 = vsyncpa [#allocation18], 1 }
 0xbe7   :  { %2569 = vsyncpa [#allocation21], 1 }
 0xbe8   :  { %2570 = vsyncpa [#allocation24], 1 }
 0xbe9   :  { %2571 = vsyncpa [#allocation27], 1 }
 0xbea   :  { %2572 = vsyncpa [#allocation4], 1 }

</bundles_post_ra>
